<compile_context>
chip_gen: v7x
topology: tpu7x:2x2x1
jax: 0.10.0
libtpu: 0.0.40
codegen_flags: <defaults>
</compile_context>

<pallas_src>
import math
import functools

import jax
import jax.numpy as jnp
from jax.experimental import pallas as pl
from jax.experimental.pallas import tpu as pltpu


# ----------------------------- kernel -------------------------------------


def _layernorm(x, gamma, beta, eps=1e-5):
    mu = jnp.mean(x, axis=-1, keepdims=True)
    xc = x - mu
    var = jnp.mean(xc * xc, axis=-1, keepdims=True)
    return xc * jax.lax.rsqrt(var + eps) * gamma + beta


def mab_kernel(
    q_ref, k_ref, mask_ref,
    wq_ref, wk_ref, wv_ref, wo_ref, vec_ref,
    out_ref,
    *, num_heads, dim_V, tb, Nq, Nk,
):
    Qf = q_ref[...].astype(jnp.float32)        # (tb*Nq, dim_Q)
    Kf = k_ref[...].astype(jnp.float32)        # (tb*Nk, dim_K)
    mask = mask_ref[...].astype(jnp.float32)   # (tb, 1, Nk) float {0., 1.}

    vec = vec_ref[...].astype(jnp.float32)     # (12, dim_V) packed params
    bq, bk, bv, bo = vec[0:1], vec[1:2], vec[2:3], vec[3:4]
    g_q, be_q = vec[4:5], vec[5:6]
    g_kv, be_kv = vec[6:7], vec[7:8]
    g_o, be_o = vec[8:9], vec[9:10]
    g_f, be_f = vec[10:11], vec[11:12]

    # pre-norms (2D, lane-dense)
    Qn = _layernorm(Qf, g_q, be_q)
    Kn = _layernorm(Kf, g_kv, be_kv)

    # linear projections (weights pre-transposed to (in, out) in the wrapper)
    scale = jnp.float32(1.0 / math.sqrt(dim_V))  # module scales by sqrt(dim_V)
    Qp = (jnp.dot(Qn, wq_ref[...], preferred_element_type=jnp.float32) + bq) * scale
    Kp = jnp.dot(Kn, wk_ref[...], preferred_element_type=jnp.float32) + bk
    Vp = jnp.dot(Kn, wv_ref[...], preferred_element_type=jnp.float32) + bv

    # (tb*N, dim_V) -> (tb, N, dim_V) — leading-dim split, layout-preserving
    Qp3 = Qp.reshape(tb, Nq, dim_V)
    Kp3 = Kp.reshape(tb, Nk, dim_V)
    Vp3 = Vp.reshape(tb, Nk, dim_V)

    ds = dim_V // num_heads

    # additive mask bias (0 where valid, -1e12 where padded) and re-zero
    # operand, broadcast ONCE to the full score shape (hoisted out of the
    # unrolled head loop — JAX does not CSE broadcast_in_dim).
    bias_b = jnp.broadcast_to((mask - 1.0) * jnp.float32(1e12), (tb, Nq, Nk))
    mask_b = jnp.broadcast_to(mask, (tb, Nq, Nk))

    head_outs = []
    for h in range(num_heads):                 # static unrolled loop (few heads)
        Qh = Qp3[:, :, h * ds:(h + 1) * ds]    # (tb, Nq, ds)
        Kh = Kp3[:, :, h * ds:(h + 1) * ds]    # (tb, Nk, ds)
        Vh = Vp3[:, :, h * ds:(h + 1) * ds]    # (tb, Nk, ds)

        s = jnp.einsum('bqd,bkd->bqk', Qh, Kh,
                       preferred_element_type=jnp.float32) + bias_b

        m = jnp.max(s, axis=-1, keepdims=True)
        e = jnp.exp(s - m)
        A = e * pl.reciprocal(jnp.sum(e, axis=-1, keepdims=True), approx=False)
        A = A * mask_b                         # re-zero padded columns

        head_outs.append(jnp.einsum('bqk,bkd->bqd', A, Vh,
                                    preferred_element_type=jnp.float32))

    O3 = jnp.concatenate(head_outs, axis=-1)   # (tb, Nq, dim_V), torch cat order
    O = Qf + O3.reshape(tb * Nq, dim_V)        # residual (dim_Q == dim_V)

    On = _layernorm(O, g_o, be_o)
    ff = jnp.maximum(
        jnp.dot(On, wo_ref[...], preferred_element_type=jnp.float32) + bo, 0.0)
    Of = O + ff
    out_ref[...] = _layernorm(Of, g_f, be_f).astype(out_ref.dtype)


# ----------------------------- wrapper -------------------------------------


def _choose_batch_tile(B, per_batch_bytes, budget_bytes=8 * 1024 * 1024):
    """Largest divisor of B that fits the VMEM budget and keeps >=2 grid steps."""
    cap = max(1, budget_bytes // max(per_batch_bytes, 1))
    if B >= 2:
        cap = min(cap, B // 2)   # keep >= 2 grid steps (2-TensorCore chips)
    cap = max(1, min(cap, B))
    tb = 1
    for d in range(1, cap + 1):
        if B % d == 0:
            tb = d
    return tb


def mab_pre_normal(Q, K, pad_mask, params, *, num_heads, batch_tile=None):
    B, Nq, dim_Q = Q.shape
    _, Nk, dim_K = K.shape
    dim_V = params["wq"].shape[1]
    assert dim_V % num_heads == 0

    per_b = 4 * (Nq * dim_Q + Nk * dim_K + Nk + Nq * dim_V)   # f32 DMA bytes / batch
    tb = batch_tile if batch_tile is not None else _choose_batch_tile(B, per_b)
    assert B % tb == 0, "batch must be divisible by the batch tile"

    # flatten batch*seq so in-kernel matmuls / stores are 2D lane-dense slabs
    Qf = Q.reshape(B * Nq, dim_Q).astype(jnp.float32)
    Kf = K.reshape(B * Nk, dim_K).astype(jnp.float32)
    mask3 = pad_mask.reshape(B, 1, Nk).astype(jnp.float32)

    # pack the 12 tiny (1, dim_V) vectors into one (12, dim_V) input
    vec = jnp.concatenate(
        [params[k] for k in ("bq", "bk", "bv", "bo",
                             "g_q", "be_q", "g_kv", "be_kv",
                             "g_o", "be_o", "g_f", "be_f")],
        axis=0).astype(jnp.float32)

    full2 = lambda shape: pl.BlockSpec(shape, lambda b: (0, 0))

    kernel = functools.partial(mab_kernel, num_heads=num_heads, dim_V=dim_V,
                               tb=tb, Nq=Nq, Nk=Nk)

    out_flat = pl.pallas_call(
        kernel,
        out_shape=jax.ShapeDtypeStruct((B * Nq, dim_V), jnp.float32),
        grid=(B // tb,),
        in_specs=[
            pl.BlockSpec((tb * Nq, dim_Q), lambda b: (b, 0)),   # Q (flattened)
            pl.BlockSpec((tb * Nk, dim_K), lambda b: (b, 0)),   # K (flattened)
            pl.BlockSpec((tb, 1, Nk), lambda b: (b, 0, 0)),     # pad_mask
            full2((dim_Q, dim_V)),                              # fc_q weight
            full2((dim_K, dim_V)),                              # fc_k weight
            full2((dim_K, dim_V)),                              # fc_v weight
            full2((dim_V, dim_V)),                              # fc_o weight
            full2((12, dim_V)),                                 # packed biases + LN params
        ],
        out_specs=pl.BlockSpec((tb * Nq, dim_V), lambda b: (b, 0)),
        compiler_params=pltpu.CompilerParams(
            dimension_semantics=("parallel",),
            vmem_limit_bytes=32 * 1024 * 1024,
        ),
    )(Qf, Kf, mask3,
      params["wq"], params["wk"], params["wv"], params["wo"], vec)

    return out_flat.reshape(B, Nq, dim_V)


# ----------------------------- reference (plain JAX) -----------------------


def reference(Q, K, pad_mask, p, *, num_heads, dim_V):
    def ln(x, g, b, eps=1e-5):
        mu = x.mean(-1, keepdims=True)
        v = ((x - mu) ** 2).mean(-1, keepdims=True)
        return (x - mu) / jnp.sqrt(v + eps) * g + b

    Qn = ln(Q, p["g_q"], p["be_q"])
    Kn = ln(K, p["g_kv"], p["be_kv"])
    Qp = Qn @ p["wq"] + p["bq"]
    Kp = Kn @ p["wk"] + p["bk"]
    Vp = Kn @ p["wv"] + p["bv"]
    H = num_heads
    Qh = jnp.concatenate(jnp.split(Qp, H, axis=2), axis=0)
    Kh = jnp.concatenate(jnp.split(Kp, H, axis=2), axis=0)
    Vh = jnp.concatenate(jnp.split(Vp, H, axis=2), axis=0)
    m = jnp.tile(pad_mask[:, None, :], (H, Q.shape[1], 1))
    score = Qh @ jnp.swapaxes(Kh, 1, 2) / math.sqrt(dim_V)
    score = jnp.where(m == 0, -1e12, score)
    A = jax.nn.softmax(score, axis=2) * m
    O = jnp.concatenate(jnp.split(A @ Vh, H, axis=0), axis=2)
    O = Q + O
    On = ln(O, p["g_o"], p["be_o"])
    Of = O + jax.nn.relu(On @ p["wo"] + p["bo"])
    return ln(Of, p["g_f"], p["be_f"])


# ----------------------------- main -----------------------------------------


if __name__ == "__main__":
    # ln=True path of MAB_PRE_NORMAL requires dim_Q == dim_K == dim_V
    B, Nq, Nk = 8, 8, 16          # B=8 exercises the batch-tiled path (tb=4, grid=2)
    dim_Q = dim_K = dim_V = 32
    num_heads = 4

    key = jax.random.PRNGKey(0)
    keys = jax.random.split(key, 12)

    def xavier(k, fan_in, fan_out):
        bound = math.sqrt(6.0 / (fan_in + fan_out))
        # stored pre-transposed as (in, out) so kernel does x @ W
        return jax.random.uniform(k, (fan_in, fan_out), jnp.float32, -bound, bound)

    def lin_bias(k, fan_in, fan_out):
        bound = 1.0 / math.sqrt(fan_in)
        return jax.random.uniform(k, (1, fan_out), jnp.float32, -bound, bound)

    params = {
        "wq": xavier(keys[0], dim_Q, dim_V), "bq": lin_bias(keys[1], dim_Q, dim_V),
        "wk": xavier(keys[2], dim_K, dim_V), "bk": lin_bias(keys[3], dim_K, dim_V),
        "wv": xavier(keys[4], dim_K, dim_V), "bv": lin_bias(keys[5], dim_K, dim_V),
        "wo": xavier(keys[6], dim_V, dim_V), "bo": lin_bias(keys[7], dim_V, dim_V),
        # LayerNorm params at PyTorch defaults (weight=1, bias=0)
        "g_q": jnp.ones((1, dim_V), jnp.float32),  "be_q": jnp.zeros((1, dim_V), jnp.float32),
        "g_kv": jnp.ones((1, dim_V), jnp.float32), "be_kv": jnp.zeros((1, dim_V), jnp.float32),
        "g_o": jnp.ones((1, dim_V), jnp.float32),  "be_o": jnp.zeros((1, dim_V), jnp.float32),
        "g_f": jnp.ones((1, dim_V), jnp.float32),  "be_f": jnp.zeros((1, dim_V), jnp.float32),
    }

    Q = jax.random.normal(keys[8], (B, Nq, dim_Q), jnp.float32)
    K = jax.random.normal(keys[9], (B, Nk, dim_K), jnp.float32)
    pad_mask = (jax.random.uniform(keys[10], (B, Nk)) > 0.3).astype(jnp.float32)

    out = mab_pre_normal(Q, K, pad_mask, params, num_heads=num_heads)
    out = jax.block_until_ready(out)

    ref = reference(Q, K, pad_mask, params, num_heads=num_heads, dim_V=dim_V)
    assert out.shape == (B, Nq, dim_V)
    assert jnp.allclose(out, ref, atol=1e-4, rtol=1e-4), (
        f"max abs err {jnp.max(jnp.abs(out - ref))}"
    )

    print("KERNEL_OK")
</pallas_src>

<mosaic_0001>
module attributes {stable_mosaic.version = 11 : i64} {
  func.func @mab_kernel(%arg0: i32, %arg1: memref<32x32xf32, #tpu.memory_space<vmem>>, %arg2: memref<64x32xf32, #tpu.memory_space<vmem>>, %arg3: memref<4x1x16xf32, #tpu.memory_space<vmem>>, %arg4: memref<32x32xf32, #tpu.memory_space<vmem>>, %arg5: memref<32x32xf32, #tpu.memory_space<vmem>>, %arg6: memref<32x32xf32, #tpu.memory_space<vmem>>, %arg7: memref<32x32xf32, #tpu.memory_space<vmem>>, %arg8: memref<12x32xf32, #tpu.memory_space<vmem>>, %arg9: memref<32x32xf32, #tpu.memory_space<vmem>>) attributes {dimension_semantics = [#tpu.dimension_semantics<parallel>], iteration_bounds = array<i64: 2>, scalar_prefetch = 0 : i64, scratch_operands = 0 : i64, tpu.core_type = #tpu.core_type<tc>, window_params = [{transform_indices = @transform_0, window_bounds = array<i64: 32, 32>}, {transform_indices = @transform_1, window_bounds = array<i64: 64, 32>}, {transform_indices = @transform_2, window_bounds = array<i64: 4, 1, 16>}, {pipeline_mode = #tpu.pipeline_mode<synchronous>, transform_indices = @transform_3, window_bounds = array<i64: 32, 32>}, {pipeline_mode = #tpu.pipeline_mode<synchronous>, transform_indices = @transform_4, window_bounds = array<i64: 32, 32>}, {pipeline_mode = #tpu.pipeline_mode<synchronous>, transform_indices = @transform_5, window_bounds = array<i64: 32, 32>}, {pipeline_mode = #tpu.pipeline_mode<synchronous>, transform_indices = @transform_6, window_bounds = array<i64: 32, 32>}, {pipeline_mode = #tpu.pipeline_mode<synchronous>, transform_indices = @transform_7, window_bounds = array<i64: 12, 32>}, {transform_indices = @transform_8, window_bounds = array<i64: 32, 32>}]} {
    %c0 = arith.constant 0 : index
    %c0_0 = arith.constant 0 : index
    %0 = vector.load %arg1[%c0, %c0_0] : memref<32x32xf32, #tpu.memory_space<vmem>>, vector<32x32xf32>
    %c0_1 = arith.constant 0 : index
    %c0_2 = arith.constant 0 : index
    %1 = vector.load %arg2[%c0_1, %c0_2] : memref<64x32xf32, #tpu.memory_space<vmem>>, vector<64x32xf32>
    %c0_3 = arith.constant 0 : index
    %c0_4 = arith.constant 0 : index
    %c0_5 = arith.constant 0 : index
    %2 = vector.load %arg3[%c0_3, %c0_4, %c0_5] : memref<4x1x16xf32, #tpu.memory_space<vmem>>, vector<4x1x16xf32>
    %c0_6 = arith.constant 0 : index
    %c0_7 = arith.constant 0 : index
    %3 = vector.load %arg8[%c0_6, %c0_7] : memref<12x32xf32, #tpu.memory_space<vmem>>, vector<12x32xf32>
    %4 = vector.extract_strided_slice %3 {offsets = [0, 0], sizes = [1, 32], strides = [1, 1]} : vector<12x32xf32> to vector<1x32xf32>
    %5 = vector.extract_strided_slice %3 {offsets = [1, 0], sizes = [1, 32], strides = [1, 1]} : vector<12x32xf32> to vector<1x32xf32>
    %6 = vector.extract_strided_slice %3 {offsets = [2, 0], sizes = [1, 32], strides = [1, 1]} : vector<12x32xf32> to vector<1x32xf32>
    %7 = vector.extract_strided_slice %3 {offsets = [3, 0], sizes = [1, 32], strides = [1, 1]} : vector<12x32xf32> to vector<1x32xf32>
    %8 = vector.extract_strided_slice %3 {offsets = [4, 0], sizes = [1, 32], strides = [1, 1]} : vector<12x32xf32> to vector<1x32xf32>
    %9 = vector.extract_strided_slice %3 {offsets = [5, 0], sizes = [1, 32], strides = [1, 1]} : vector<12x32xf32> to vector<1x32xf32>
    %10 = vector.extract_strided_slice %3 {offsets = [6, 0], sizes = [1, 32], strides = [1, 1]} : vector<12x32xf32> to vector<1x32xf32>
    %11 = vector.extract_strided_slice %3 {offsets = [7, 0], sizes = [1, 32], strides = [1, 1]} : vector<12x32xf32> to vector<1x32xf32>
    %12 = vector.extract_strided_slice %3 {offsets = [8, 0], sizes = [1, 32], strides = [1, 1]} : vector<12x32xf32> to vector<1x32xf32>
    %13 = vector.extract_strided_slice %3 {offsets = [9, 0], sizes = [1, 32], strides = [1, 1]} : vector<12x32xf32> to vector<1x32xf32>
    %14 = vector.extract_strided_slice %3 {offsets = [10, 0], sizes = [1, 32], strides = [1, 1]} : vector<12x32xf32> to vector<1x32xf32>
    %15 = vector.extract_strided_slice %3 {offsets = [11, 0], sizes = [1, 32], strides = [1, 1]} : vector<12x32xf32> to vector<1x32xf32>
    %cst = arith.constant dense<0.000000e+00> : vector<32xf32>
    %16 = vector.multi_reduction <add>, %0, %cst [1] : vector<32x32xf32> to vector<32xf32>
    %17 = vector.shape_cast %16 : vector<32xf32> to vector<32x1xf32>
    %cst_8 = arith.constant 3.200000e+01 : f32
    %18 = vector.broadcast %cst_8 : f32 to vector<32x1xf32>
    %19 = arith.divf %17, %18 : vector<32x1xf32>
    %20 = vector.broadcast %19 : vector<32x1xf32> to vector<32x32xf32>
    %21 = arith.subf %0, %20 : vector<32x32xf32>
    %22 = arith.mulf %21, %21 : vector<32x32xf32>
    %cst_9 = arith.constant dense<0.000000e+00> : vector<32xf32>
    %23 = vector.multi_reduction <add>, %22, %cst_9 [1] : vector<32x32xf32> to vector<32xf32>
    %24 = vector.shape_cast %23 : vector<32xf32> to vector<32x1xf32>
    %cst_10 = arith.constant 3.200000e+01 : f32
    %25 = vector.broadcast %cst_10 : f32 to vector<32x1xf32>
    %26 = arith.divf %24, %25 : vector<32x1xf32>
    %cst_11 = arith.constant 9.99999974E-6 : f32
    %27 = vector.broadcast %cst_11 : f32 to vector<32x1xf32>
    %28 = arith.addf %26, %27 : vector<32x1xf32>
    %29 = math.rsqrt %28 : vector<32x1xf32>
    %30 = vector.broadcast %29 : vector<32x1xf32> to vector<32x32xf32>
    %31 = arith.mulf %21, %30 : vector<32x32xf32>
    %32 = vector.broadcast %8 : vector<1x32xf32> to vector<32x32xf32>
    %33 = arith.mulf %31, %32 : vector<32x32xf32>
    %34 = vector.broadcast %9 : vector<1x32xf32> to vector<32x32xf32>
    %35 = arith.addf %33, %34 : vector<32x32xf32>
    %cst_12 = arith.constant dense<0.000000e+00> : vector<64xf32>
    %36 = vector.multi_reduction <add>, %1, %cst_12 [1] : vector<64x32xf32> to vector<64xf32>
    %37 = vector.shape_cast %36 : vector<64xf32> to vector<64x1xf32>
    %cst_13 = arith.constant 3.200000e+01 : f32
    %38 = vector.broadcast %cst_13 : f32 to vector<64x1xf32>
    %39 = arith.divf %37, %38 : vector<64x1xf32>
    %40 = vector.broadcast %39 : vector<64x1xf32> to vector<64x32xf32>
    %41 = arith.subf %1, %40 : vector<64x32xf32>
    %42 = arith.mulf %41, %41 : vector<64x32xf32>
    %cst_14 = arith.constant dense<0.000000e+00> : vector<64xf32>
    %43 = vector.multi_reduction <add>, %42, %cst_14 [1] : vector<64x32xf32> to vector<64xf32>
    %44 = vector.shape_cast %43 : vector<64xf32> to vector<64x1xf32>
    %cst_15 = arith.constant 3.200000e+01 : f32
    %45 = vector.broadcast %cst_15 : f32 to vector<64x1xf32>
    %46 = arith.divf %44, %45 : vector<64x1xf32>
    %cst_16 = arith.constant 9.99999974E-6 : f32
    %47 = vector.broadcast %cst_16 : f32 to vector<64x1xf32>
    %48 = arith.addf %46, %47 : vector<64x1xf32>
    %49 = math.rsqrt %48 : vector<64x1xf32>
    %50 = vector.broadcast %49 : vector<64x1xf32> to vector<64x32xf32>
    %51 = arith.mulf %41, %50 : vector<64x32xf32>
    %52 = vector.broadcast %10 : vector<1x32xf32> to vector<64x32xf32>
    %53 = arith.mulf %51, %52 : vector<64x32xf32>
    %54 = vector.broadcast %11 : vector<1x32xf32> to vector<64x32xf32>
    %55 = arith.addf %53, %54 : vector<64x32xf32>
    %c0_17 = arith.constant 0 : index
    %c0_18 = arith.constant 0 : index
    %56 = vector.load %arg4[%c0_17, %c0_18] : memref<32x32xf32, #tpu.memory_space<vmem>>, vector<32x32xf32>
    %cst_19 = arith.constant dense<0.000000e+00> : vector<32x32xf32>
    %57 = tpu.matmul %35, %56, %cst_19 {dimension_numbers = #tpu.dot_dimension_numbers<[1], [0], [0], [1], [0, 0, 1, 1], [], []>} : vector<32x32xf32>, vector<32x32xf32>, vector<32x32xf32> -> vector<32x32xf32>
    %58 = vector.broadcast %4 : vector<1x32xf32> to vector<32x32xf32>
    %59 = arith.addf %57, %58 : vector<32x32xf32>
    %cst_20 = arith.constant 0.176776692 : f32
    %60 = vector.broadcast %cst_20 : f32 to vector<32x32xf32>
    %61 = arith.mulf %59, %60 : vector<32x32xf32>
    %c0_21 = arith.constant 0 : index
    %c0_22 = arith.constant 0 : index
    %62 = vector.load %arg5[%c0_21, %c0_22] : memref<32x32xf32, #tpu.memory_space<vmem>>, vector<32x32xf32>
    %cst_23 = arith.constant dense<0.000000e+00> : vector<64x32xf32>
    %63 = tpu.matmul %55, %62, %cst_23 {dimension_numbers = #tpu.dot_dimension_numbers<[1], [0], [0], [1], [0, 0, 1, 1], [], []>} : vector<64x32xf32>, vector<32x32xf32>, vector<64x32xf32> -> vector<64x32xf32>
    %64 = vector.broadcast %5 : vector<1x32xf32> to vector<64x32xf32>
    %65 = arith.addf %63, %64 : vector<64x32xf32>
    %c0_24 = arith.constant 0 : index
    %c0_25 = arith.constant 0 : index
    %66 = vector.load %arg6[%c0_24, %c0_25] : memref<32x32xf32, #tpu.memory_space<vmem>>, vector<32x32xf32>
    %cst_26 = arith.constant dense<0.000000e+00> : vector<64x32xf32>
    %67 = tpu.matmul %55, %66, %cst_26 {dimension_numbers = #tpu.dot_dimension_numbers<[1], [0], [0], [1], [0, 0, 1, 1], [], []>} : vector<64x32xf32>, vector<32x32xf32>, vector<64x32xf32> -> vector<64x32xf32>
    %68 = vector.broadcast %6 : vector<1x32xf32> to vector<64x32xf32>
    %69 = arith.addf %67, %68 : vector<64x32xf32>
    %70 = vector.shape_cast %61 : vector<32x32xf32> to vector<4x8x32xf32>
    %71 = vector.shape_cast %65 : vector<64x32xf32> to vector<4x16x32xf32>
    %72 = vector.shape_cast %69 : vector<64x32xf32> to vector<4x16x32xf32>
    %cst_27 = arith.constant 1.000000e+00 : f32
    %73 = vector.broadcast %cst_27 : f32 to vector<4x1x16xf32>
    %74 = arith.subf %2, %73 : vector<4x1x16xf32>
    %cst_28 = arith.constant 9.99999995E+11 : f32
    %75 = vector.broadcast %cst_28 : f32 to vector<4x1x16xf32>
    %76 = arith.mulf %74, %75 : vector<4x1x16xf32>
    %77 = vector.shape_cast %76 : vector<4x1x16xf32> to vector<4x1x16xf32>
    %78 = vector.broadcast %77 : vector<4x1x16xf32> to vector<4x8x16xf32>
    %79 = vector.shape_cast %2 : vector<4x1x16xf32> to vector<4x1x16xf32>
    %80 = vector.broadcast %79 : vector<4x1x16xf32> to vector<4x8x16xf32>
    %81 = vector.extract_strided_slice %70 {offsets = [0, 0, 0], sizes = [4, 8, 8], strides = [1, 1, 1]} : vector<4x8x32xf32> to vector<4x8x8xf32>
    %82 = vector.extract_strided_slice %71 {offsets = [0, 0, 0], sizes = [4, 16, 8], strides = [1, 1, 1]} : vector<4x16x32xf32> to vector<4x16x8xf32>
    %83 = vector.extract_strided_slice %72 {offsets = [0, 0, 0], sizes = [4, 16, 8], strides = [1, 1, 1]} : vector<4x16x32xf32> to vector<4x16x8xf32>
    "tpu.trace_start"() <{level = 10 : i32, message = "bqd,bkd->bqk"}> : () -> ()
    %cst_29 = arith.constant dense<0.000000e+00> : vector<4x8x16xf32>
    %84 = tpu.matmul %81, %82, %cst_29 {dimension_numbers = #tpu.dot_dimension_numbers<[2], [2], [1], [1], [0, 0, 0, 1, 1, 1], [0], [0]>} : vector<4x8x8xf32>, vector<4x16x8xf32>, vector<4x8x16xf32> -> vector<4x8x16xf32>
    "tpu.trace_stop"() : () -> ()
    %85 = arith.addf %84, %78 : vector<4x8x16xf32>
    %cst_30 = arith.constant dense<0xFF800000> : vector<4x8xf32>
    %86 = vector.multi_reduction <maximumf>, %85, %cst_30 [2] : vector<4x8x16xf32> to vector<4x8xf32>
    %87 = vector.shape_cast %86 : vector<4x8xf32> to vector<4x8x1xf32>
    %88 = vector.broadcast %87 : vector<4x8x1xf32> to vector<4x8x16xf32>
    %89 = arith.subf %85, %88 : vector<4x8x16xf32>
    %90 = math.exp %89 : vector<4x8x16xf32>
    %cst_31 = arith.constant dense<0.000000e+00> : vector<4x8xf32>
    %91 = vector.multi_reduction <add>, %90, %cst_31 [2] : vector<4x8x16xf32> to vector<4x8xf32>
    %92 = vector.shape_cast %91 : vector<4x8xf32> to vector<4x8x1xf32>
    %93 = tpu.reciprocal %92 : vector<4x8x1xf32> -> vector<4x8x1xf32>
    %94 = vector.broadcast %93 : vector<4x8x1xf32> to vector<4x8x16xf32>
    %95 = arith.mulf %90, %94 : vector<4x8x16xf32>
    %96 = arith.mulf %95, %80 : vector<4x8x16xf32>
    "tpu.trace_start"() <{level = 10 : i32, message = "bqk,bkd->bqd"}> : () -> ()
    %cst_32 = arith.constant dense<0.000000e+00> : vector<4x8x8xf32>
    %97 = tpu.matmul %96, %83, %cst_32 {dimension_numbers = #tpu.dot_dimension_numbers<[2], [1], [1], [2], [0, 0, 0, 1, 1, 2], [0], [0]>} : vector<4x8x16xf32>, vector<4x16x8xf32>, vector<4x8x8xf32> -> vector<4x8x8xf32>
    "tpu.trace_stop"() : () -> ()
    %98 = vector.extract_strided_slice %70 {offsets = [0, 0, 8], sizes = [4, 8, 8], strides = [1, 1, 1]} : vector<4x8x32xf32> to vector<4x8x8xf32>
    %99 = vector.extract_strided_slice %71 {offsets = [0, 0, 8], sizes = [4, 16, 8], strides = [1, 1, 1]} : vector<4x16x32xf32> to vector<4x16x8xf32>
    %100 = vector.extract_strided_slice %72 {offsets = [0, 0, 8], sizes = [4, 16, 8], strides = [1, 1, 1]} : vector<4x16x32xf32> to vector<4x16x8xf32>
    "tpu.trace_start"() <{level = 10 : i32, message = "bqd,bkd->bqk"}> : () -> ()
    %cst_33 = arith.constant dense<0.000000e+00> : vector<4x8x16xf32>
    %101 = tpu.matmul %98, %99, %cst_33 {dimension_numbers = #tpu.dot_dimension_numbers<[2], [2], [1], [1], [0, 0, 0, 1, 1, 1], [0], [0]>} : vector<4x8x8xf32>, vector<4x16x8xf32>, vector<4x8x16xf32> -> vector<4x8x16xf32>
    "tpu.trace_stop"() : () -> ()
    %102 = arith.addf %101, %78 : vector<4x8x16xf32>
    %cst_34 = arith.constant dense<0xFF800000> : vector<4x8xf32>
    %103 = vector.multi_reduction <maximumf>, %102, %cst_34 [2] : vector<4x8x16xf32> to vector<4x8xf32>
    %104 = vector.shape_cast %103 : vector<4x8xf32> to vector<4x8x1xf32>
    %105 = vector.broadcast %104 : vector<4x8x1xf32> to vector<4x8x16xf32>
    %106 = arith.subf %102, %105 : vector<4x8x16xf32>
    %107 = math.exp %106 : vector<4x8x16xf32>
    %cst_35 = arith.constant dense<0.000000e+00> : vector<4x8xf32>
    %108 = vector.multi_reduction <add>, %107, %cst_35 [2] : vector<4x8x16xf32> to vector<4x8xf32>
    %109 = vector.shape_cast %108 : vector<4x8xf32> to vector<4x8x1xf32>
    %110 = tpu.reciprocal %109 : vector<4x8x1xf32> -> vector<4x8x1xf32>
    %111 = vector.broadcast %110 : vector<4x8x1xf32> to vector<4x8x16xf32>
    %112 = arith.mulf %107, %111 : vector<4x8x16xf32>
    %113 = arith.mulf %112, %80 : vector<4x8x16xf32>
    "tpu.trace_start"() <{level = 10 : i32, message = "bqk,bkd->bqd"}> : () -> ()
    %cst_36 = arith.constant dense<0.000000e+00> : vector<4x8x8xf32>
    %114 = tpu.matmul %113, %100, %cst_36 {dimension_numbers = #tpu.dot_dimension_numbers<[2], [1], [1], [2], [0, 0, 0, 1, 1, 2], [0], [0]>} : vector<4x8x16xf32>, vector<4x16x8xf32>, vector<4x8x8xf32> -> vector<4x8x8xf32>
    "tpu.trace_stop"() : () -> ()
    %115 = vector.extract_strided_slice %70 {offsets = [0, 0, 16], sizes = [4, 8, 8], strides = [1, 1, 1]} : vector<4x8x32xf32> to vector<4x8x8xf32>
    %116 = vector.extract_strided_slice %71 {offsets = [0, 0, 16], sizes = [4, 16, 8], strides = [1, 1, 1]} : vector<4x16x32xf32> to vector<4x16x8xf32>
    %117 = vector.extract_strided_slice %72 {offsets = [0, 0, 16], sizes = [4, 16, 8], strides = [1, 1, 1]} : vector<4x16x32xf32> to vector<4x16x8xf32>
    "tpu.trace_start"() <{level = 10 : i32, message = "bqd,bkd->bqk"}> : () -> ()
    %cst_37 = arith.constant dense<0.000000e+00> : vector<4x8x16xf32>
    %118 = tpu.matmul %115, %116, %cst_37 {dimension_numbers = #tpu.dot_dimension_numbers<[2], [2], [1], [1], [0, 0, 0, 1, 1, 1], [0], [0]>} : vector<4x8x8xf32>, vector<4x16x8xf32>, vector<4x8x16xf32> -> vector<4x8x16xf32>
    "tpu.trace_stop"() : () -> ()
    %119 = arith.addf %118, %78 : vector<4x8x16xf32>
    %cst_38 = arith.constant dense<0xFF800000> : vector<4x8xf32>
    %120 = vector.multi_reduction <maximumf>, %119, %cst_38 [2] : vector<4x8x16xf32> to vector<4x8xf32>
    %121 = vector.shape_cast %120 : vector<4x8xf32> to vector<4x8x1xf32>
    %122 = vector.broadcast %121 : vector<4x8x1xf32> to vector<4x8x16xf32>
    %123 = arith.subf %119, %122 : vector<4x8x16xf32>
    %124 = math.exp %123 : vector<4x8x16xf32>
    %cst_39 = arith.constant dense<0.000000e+00> : vector<4x8xf32>
    %125 = vector.multi_reduction <add>, %124, %cst_39 [2] : vector<4x8x16xf32> to vector<4x8xf32>
    %126 = vector.shape_cast %125 : vector<4x8xf32> to vector<4x8x1xf32>
    %127 = tpu.reciprocal %126 : vector<4x8x1xf32> -> vector<4x8x1xf32>
    %128 = vector.broadcast %127 : vector<4x8x1xf32> to vector<4x8x16xf32>
    %129 = arith.mulf %124, %128 : vector<4x8x16xf32>
    %130 = arith.mulf %129, %80 : vector<4x8x16xf32>
    "tpu.trace_start"() <{level = 10 : i32, message = "bqk,bkd->bqd"}> : () -> ()
    %cst_40 = arith.constant dense<0.000000e+00> : vector<4x8x8xf32>
    %131 = tpu.matmul %130, %117, %cst_40 {dimension_numbers = #tpu.dot_dimension_numbers<[2], [1], [1], [2], [0, 0, 0, 1, 1, 2], [0], [0]>} : vector<4x8x16xf32>, vector<4x16x8xf32>, vector<4x8x8xf32> -> vector<4x8x8xf32>
    "tpu.trace_stop"() : () -> ()
    %132 = vector.extract_strided_slice %70 {offsets = [0, 0, 24], sizes = [4, 8, 8], strides = [1, 1, 1]} : vector<4x8x32xf32> to vector<4x8x8xf32>
    %133 = vector.extract_strided_slice %71 {offsets = [0, 0, 24], sizes = [4, 16, 8], strides = [1, 1, 1]} : vector<4x16x32xf32> to vector<4x16x8xf32>
    %134 = vector.extract_strided_slice %72 {offsets = [0, 0, 24], sizes = [4, 16, 8], strides = [1, 1, 1]} : vector<4x16x32xf32> to vector<4x16x8xf32>
    "tpu.trace_start"() <{level = 10 : i32, message = "bqd,bkd->bqk"}> : () -> ()
    %cst_41 = arith.constant dense<0.000000e+00> : vector<4x8x16xf32>
    %135 = tpu.matmul %132, %133, %cst_41 {dimension_numbers = #tpu.dot_dimension_numbers<[2], [2], [1], [1], [0, 0, 0, 1, 1, 1], [0], [0]>} : vector<4x8x8xf32>, vector<4x16x8xf32>, vector<4x8x16xf32> -> vector<4x8x16xf32>
    "tpu.trace_stop"() : () -> ()
    %136 = arith.addf %135, %78 : vector<4x8x16xf32>
    %cst_42 = arith.constant dense<0xFF800000> : vector<4x8xf32>
    %137 = vector.multi_reduction <maximumf>, %136, %cst_42 [2] : vector<4x8x16xf32> to vector<4x8xf32>
    %138 = vector.shape_cast %137 : vector<4x8xf32> to vector<4x8x1xf32>
    %139 = vector.broadcast %138 : vector<4x8x1xf32> to vector<4x8x16xf32>
    %140 = arith.subf %136, %139 : vector<4x8x16xf32>
    %141 = math.exp %140 : vector<4x8x16xf32>
    %cst_43 = arith.constant dense<0.000000e+00> : vector<4x8xf32>
    %142 = vector.multi_reduction <add>, %141, %cst_43 [2] : vector<4x8x16xf32> to vector<4x8xf32>
    %143 = vector.shape_cast %142 : vector<4x8xf32> to vector<4x8x1xf32>
    %144 = tpu.reciprocal %143 : vector<4x8x1xf32> -> vector<4x8x1xf32>
    %145 = vector.broadcast %144 : vector<4x8x1xf32> to vector<4x8x16xf32>
    %146 = arith.mulf %141, %145 : vector<4x8x16xf32>
    %147 = arith.mulf %146, %80 : vector<4x8x16xf32>
    "tpu.trace_start"() <{level = 10 : i32, message = "bqk,bkd->bqd"}> : () -> ()
    %cst_44 = arith.constant dense<0.000000e+00> : vector<4x8x8xf32>
    %148 = tpu.matmul %147, %134, %cst_44 {dimension_numbers = #tpu.dot_dimension_numbers<[2], [1], [1], [2], [0, 0, 0, 1, 1, 2], [0], [0]>} : vector<4x8x16xf32>, vector<4x16x8xf32>, vector<4x8x8xf32> -> vector<4x8x8xf32>
    "tpu.trace_stop"() : () -> ()
    %149 = tpu.concatenate %97, %114, %131, %148 in 2 : vector<4x8x8xf32>, vector<4x8x8xf32>, vector<4x8x8xf32>, vector<4x8x8xf32> -> vector<4x8x32xf32>
    %150 = vector.shape_cast %149 : vector<4x8x32xf32> to vector<32x32xf32>
    %151 = arith.addf %0, %150 : vector<32x32xf32>
    %cst_45 = arith.constant dense<0.000000e+00> : vector<32xf32>
    %152 = vector.multi_reduction <add>, %151, %cst_45 [1] : vector<32x32xf32> to vector<32xf32>
    %153 = vector.shape_cast %152 : vector<32xf32> to vector<32x1xf32>
    %cst_46 = arith.constant 3.200000e+01 : f32
    %154 = vector.broadcast %cst_46 : f32 to vector<32x1xf32>
    %155 = arith.divf %153, %154 : vector<32x1xf32>
    %156 = vector.broadcast %155 : vector<32x1xf32> to vector<32x32xf32>
    %157 = arith.subf %151, %156 : vector<32x32xf32>
    %158 = arith.mulf %157, %157 : vector<32x32xf32>
    %cst_47 = arith.constant dense<0.000000e+00> : vector<32xf32>
    %159 = vector.multi_reduction <add>, %158, %cst_47 [1] : vector<32x32xf32> to vector<32xf32>
    %160 = vector.shape_cast %159 : vector<32xf32> to vector<32x1xf32>
    %cst_48 = arith.constant 3.200000e+01 : f32
    %161 = vector.broadcast %cst_48 : f32 to vector<32x1xf32>
    %162 = arith.divf %160, %161 : vector<32x1xf32>
    %cst_49 = arith.constant 9.99999974E-6 : f32
    %163 = vector.broadcast %cst_49 : f32 to vector<32x1xf32>
    %164 = arith.addf %162, %163 : vector<32x1xf32>
    %165 = math.rsqrt %164 : vector<32x1xf32>
    %166 = vector.broadcast %165 : vector<32x1xf32> to vector<32x32xf32>
    %167 = arith.mulf %157, %166 : vector<32x32xf32>
    %168 = vector.broadcast %12 : vector<1x32xf32> to vector<32x32xf32>
    %169 = arith.mulf %167, %168 : vector<32x32xf32>
    %170 = vector.broadcast %13 : vector<1x32xf32> to vector<32x32xf32>
    %171 = arith.addf %169, %170 : vector<32x32xf32>
    %c0_50 = arith.constant 0 : index
    %c0_51 = arith.constant 0 : index
    %172 = vector.load %arg7[%c0_50, %c0_51] : memref<32x32xf32, #tpu.memory_space<vmem>>, vector<32x32xf32>
    %cst_52 = arith.constant dense<0.000000e+00> : vector<32x32xf32>
    %173 = tpu.matmul %171, %172, %cst_52 {dimension_numbers = #tpu.dot_dimension_numbers<[1], [0], [0], [1], [0, 0, 1, 1], [], []>} : vector<32x32xf32>, vector<32x32xf32>, vector<32x32xf32> -> vector<32x32xf32>
    %174 = vector.broadcast %7 : vector<1x32xf32> to vector<32x32xf32>
    %175 = arith.addf %173, %174 : vector<32x32xf32>
    %cst_53 = arith.constant 0.000000e+00 : f32
    %176 = vector.broadcast %cst_53 : f32 to vector<32x32xf32>
    %177 = arith.maximumf %175, %176 : vector<32x32xf32>
    %178 = arith.addf %151, %177 : vector<32x32xf32>
    %cst_54 = arith.constant dense<0.000000e+00> : vector<32xf32>
    %179 = vector.multi_reduction <add>, %178, %cst_54 [1] : vector<32x32xf32> to vector<32xf32>
    %180 = vector.shape_cast %179 : vector<32xf32> to vector<32x1xf32>
    %cst_55 = arith.constant 3.200000e+01 : f32
    %181 = vector.broadcast %cst_55 : f32 to vector<32x1xf32>
    %182 = arith.divf %180, %181 : vector<32x1xf32>
    %183 = vector.broadcast %182 : vector<32x1xf32> to vector<32x32xf32>
    %184 = arith.subf %178, %183 : vector<32x32xf32>
    %185 = arith.mulf %184, %184 : vector<32x32xf32>
    %cst_56 = arith.constant dense<0.000000e+00> : vector<32xf32>
    %186 = vector.multi_reduction <add>, %185, %cst_56 [1] : vector<32x32xf32> to vector<32xf32>
    %187 = vector.shape_cast %186 : vector<32xf32> to vector<32x1xf32>
    %cst_57 = arith.constant 3.200000e+01 : f32
    %188 = vector.broadcast %cst_57 : f32 to vector<32x1xf32>
    %189 = arith.divf %187, %188 : vector<32x1xf32>
    %cst_58 = arith.constant 9.99999974E-6 : f32
    %190 = vector.broadcast %cst_58 : f32 to vector<32x1xf32>
    %191 = arith.addf %189, %190 : vector<32x1xf32>
    %192 = math.rsqrt %191 : vector<32x1xf32>
    %193 = vector.broadcast %192 : vector<32x1xf32> to vector<32x32xf32>
    %194 = arith.mulf %184, %193 : vector<32x32xf32>
    %195 = vector.broadcast %14 : vector<1x32xf32> to vector<32x32xf32>
    %196 = arith.mulf %194, %195 : vector<32x32xf32>
    %197 = vector.broadcast %15 : vector<1x32xf32> to vector<32x32xf32>
    %198 = arith.addf %196, %197 : vector<32x32xf32>
    %c0_59 = arith.constant 0 : index
    %c0_60 = arith.constant 0 : index
    %199 = vector.load %arg9[%c0_59, %c0_60] : memref<32x32xf32, #tpu.memory_space<vmem>>, vector<32x32xf32>
    tpu.vector_store %arg9[%c0_59, %c0_60], %198 {strides = array<i32>} : memref<32x32xf32, #tpu.memory_space<vmem>>, vector<32x32xf32>,
    return
  }
  func.func @transform_0(%arg0: i32) -> (i32, i32) {
    %c0_i32 = arith.constant 0 : i32
    %c0_i32_0 = arith.constant 0 : i32
    return %arg0, %c0_i32 : i32, i32
  }
  func.func @transform_1(%arg0: i32) -> (i32, i32) {
    %c0_i32 = arith.constant 0 : i32
    %c0_i32_0 = arith.constant 0 : i32
    return %arg0, %c0_i32 : i32, i32
  }
  func.func @transform_2(%arg0: i32) -> (i32, i32, i32) {
    %c0_i32 = arith.constant 0 : i32
    %c0_i32_0 = arith.constant 0 : i32
    %c0_i32_1 = arith.constant 0 : i32
    return %arg0, %c0_i32, %c0_i32_0 : i32, i32, i32
  }
  func.func @transform_3(%arg0: i32) -> (i32, i32) {
    %c0_i32 = arith.constant 0 : i32
    %c0_i32_0 = arith.constant 0 : i32
    %c0_i32_1 = arith.constant 0 : i32
    return %c0_i32, %c0_i32_0 : i32, i32
  }
  func.func @transform_4(%arg0: i32) -> (i32, i32) {
    %c0_i32 = arith.constant 0 : i32
    %c0_i32_0 = arith.constant 0 : i32
    %c0_i32_1 = arith.constant 0 : i32
    return %c0_i32, %c0_i32_0 : i32, i32
  }
  func.func @transform_5(%arg0: i32) -> (i32, i32) {
    %c0_i32 = arith.constant 0 : i32
    %c0_i32_0 = arith.constant 0 : i32
    %c0_i32_1 = arith.constant 0 : i32
    return %c0_i32, %c0_i32_0 : i32, i32
  }
  func.func @transform_6(%arg0: i32) -> (i32, i32) {
    %c0_i32 = arith.constant 0 : i32
    %c0_i32_0 = arith.constant 0 : i32
    %c0_i32_1 = arith.constant 0 : i32
    return %c0_i32, %c0_i32_0 : i32, i32
  }
  func.func @transform_7(%arg0: i32) -> (i32, i32) {
    %c0_i32 = arith.constant 0 : i32
    %c0_i32_0 = arith.constant 0 : i32
    %c0_i32_1 = arith.constant 0 : i32
    return %c0_i32, %c0_i32_0 : i32, i32
  }
  func.func @transform_8(%arg0: i32) -> (i32, i32) {
    %c0_i32 = arith.constant 0 : i32
    %c0_i32_0 = arith.constant 0 : i32
    return %arg0, %c0_i32 : i32, i32
  }
}

</mosaic_0001>

<bundles_post_ra>
// kernel: tpu_custom_call.1
= control target key start
LH: loop header
LB: loop body
LE: loop exit
PB: predicated region body
PF: predicated region fallthrough
CT: control target
= control target key end

     0   :  { %s5104_s27 = smov 0   ;;  %s5863_s0 = inlined_call_operand.vmem [shape: f32[64,32], index: 0, kind: input, shape index: {}]   ;;  %s5864_s1 = inlined_call_operand.vmem [shape: f32[128,32], index: 1, kind: input, shape index: {}]   ;;  %s5865_s2 = inlined_call_operand.vmem [shape: f32[8,1,16], index: 2, kind: input, shape index: {}]   ;;  %s5866_s3 = inlined_call_operand.vmem [shape: f32[32,32], index: 3, kind: input, shape index: {}]   ;;  %s5867_s4 = inlined_call_operand.vmem [shape: f32[32,32], index: 4, kind: input, shape index: {}]   ;;  %s5868_s5 = inlined_call_operand.vmem [shape: f32[32,32], index: 5, kind: input, shape index: {}]   ;;  %s5869_s6 = inlined_call_operand.vmem [shape: f32[32,32], index: 6, kind: input, shape index: {}]   ;;  %s5870_s7 = inlined_call_operand.vmem [shape: f32[12,32], index: 7, kind: input, shape index: {}]   ;;  %s5871_s8 = inlined_call_operand.vmem [shape: f32[64,32], index: 8, kind: output, shape index: {}]  }
   0x1 LB: > { %s4118_s28 = sadd.s32 4294967295, %s5048_s27   ;;  %p4122_p0 = scmp.ge.s32.totalorder %s5048_s27, 1  ;;  %s5048_s27 = sphi %s5104_s27, %s18_s27  }
   0x2   : > { %p284_p1 = scmp.lt.s32.totalorder %s5048_s27, 3 }
   0x4   : > { %p285_p2 = pnand %p4122_p0, %p284_p1 }
   0x5   : > { %s4123_s29 = sshll.u32 (!%p285_p2), %s4118_s28, 2  ;;  %s4125_s30 = sshll.u32 (!%p285_p2), %s4118_s28, 3  ;;  %vm368_vm0 = vcmask (!%p285_p2), 261120   ;;  %vm5051_vm1 = vmmov (!%p285_p2), 0   ;;  %vm981_vm2 = vcmask (!%p285_p2), 64512   ;;  %vm1298_vm4 = vcmask (!%p285_p2), 130048  }
   0x6   : > { %288 = sbr.rel (%p285_p2) target bundleno = 4118 (0x1016), region = 52  ;;  %p328_p3 = scmp.lt.s32.totalorder (!%p285_p2), %s4123_s29, 7  ;;  %vm5333_vm3 = vmpackc.low (!%p285_p2), %vm981_vm2, %vm981_vm2  ;;  %vm3779_vm5 = vcmask (!%p285_p2), 195584  }
   0x7   : > { %p334_p4 = scmp.lt.s32.totalorder (!%p285_p2), %s4125_s30, 15  ;;  %s5054_s10 = smov (!%p285_p2), 112  }
   0x8   : > { %s5055_s11 = smov (!%p285_p2), 104   ;;  %s5057_s14 = smov (!%p285_p2), 16  }
   0x9   : > { %s5058_s15 = smov (!%p285_p2), 24  }
   0xd   : > { %s5875_s29 = smov (!%p328_p3, %s4123_s29), 7  ;;  %s5877_s30 = smov (!%p334_p4, %s4125_s30), 15 }
   0xe   : > { %s4124_s9 = sshll.u32 %s5875_s29, 3  ;;  %s4126_s13 = sshll.u32 %s5877_s30, 3 }
   0xf   : > { %s5120_s12 = scalar_lea.vmem %s5863_s0, %s4124_s9  ;;  %s337_s16 = scalar_lea.vmem %s5864_s1, %s4126_s13 }
  0x10   : > { %v350_v0 = vld [vmem:[%s5120_s12] sm:$0xff]  ;;  %v352_v1 = vld [vmem:[%s5120_s12 + $0x10] sm:$0xff]  ;;  %v351_v2 = vld [vmem:[%s5120_s12 + $0x8] sm:$0xff]  ;;  %s342_s28 = scalar_lea.vmem %s5865_s2, %s5875_s29  ;;  %s5053_s30 = smov 120  }
  0x11   : > { %v369_v3 = vsel %vm368_vm0, %v350_v0, 0.0  ;;  %v375_v4 = vsel %vm368_vm0, %v352_v1, 0.0  ;;  %v353_v5 = vld [vmem:[%s5120_s12 + $0x18] sm:$0xff]  ;;  %v372_v6 = vsel %vm368_vm0, %v351_v2, 0.0  ;;  %v354_v8 = vld [vmem:[%s337_s16] sm:$0xff]  ;;  %v355_v9 = vld [vmem:[%s337_s16 + $0x8] sm:$0xff] }
  0x12   : > { %370 = vadd.xlane.f32.xlu0 %v369_v3  ;;  %376 = vadd.xlane.f32.xlu1 %v375_v4  ;;  %v378_v7 = vsel %vm368_vm0, %v353_v5, 0.0  ;;  %v438_v10 = vsel %vm368_vm0, %v354_v8, 0.0  ;;  %v441_v11 = vsel %vm368_vm0, %v355_v9, 0.0  ;;  %v356_v12 = vld [vmem:[%s337_s16 + $0x10] sm:$0xff]  ;;  %v357_v13 = vld [vmem:[%s337_s16 + $0x18] sm:$0xff]  ;;  %v358_v16 = vld [vmem:[%s337_s16 + $0x20] sm:$0xff] }
  0x13   : > { %v444_v14 = vsel %vm368_vm0, %v356_v12, 0.0  ;;  %v447_v15 = vsel %vm368_vm0, %v357_v13, 0.0  ;;  %v359_v17 = vld [vmem:[%s337_s16 + $0x28] sm:$0xff]  ;;  %v450_v18 = vsel %vm368_vm0, %v358_v16, 0.0  ;;  %v5139_v20 = vld [vmem:[%s337_s16 + $0x30] sm:$0xff]  ;;  %v5141_v21 = vld [vmem:[%s337_s16 + $0x38] sm:$0xff] }
  0x14   : > { %v453_v19 = vsel %vm368_vm0, %v359_v17, 0.0  ;;  %v456_v22 = vsel %vm368_vm0, %v5139_v20, 0.0  ;;  %v459_v23 = vsel %vm368_vm0, %v5141_v21, 0.0  ;;  %s5056_s13 = smov 8  }
  0x16   : > { %373 = vadd.xlane.f32.xlu0 %v372_v6  ;;  %379 = vadd.xlane.f32.xlu1 %v378_v7 }
  0x1a   : > { %439 = vadd.xlane.f32.xlu0 %v438_v10  ;;  %442 = vadd.xlane.f32.xlu1 %v441_v11 }
  0x1e   : > { %445 = vadd.xlane.f32.xlu0 %v444_v14  ;;  %448 = vadd.xlane.f32.xlu1 %v447_v15 }
  0x22   : > { %451 = vadd.xlane.f32.xlu0 %v450_v18  ;;  %454 = vadd.xlane.f32.xlu1 %v453_v19 }
  0x26   : > { %457 = vadd.xlane.f32.xlu0 %v456_v22  ;;  %460 = vadd.xlane.f32.xlu1 %v459_v23  ;;  %v568_v23 = vld [vmem:[%s5866_s3 + $0x10] sm:$0xff] }
  0x9f   : > { %v371_v24 = vpop.xlane.xlu0 %370  ;;  %v377_v25 = vpop.xlane.xlu1 %376 }
  0xa0   : > { %v382_v26 = vmul.f32 0.03125, %v371_v24  ;;  %v384_v27 = vmul.f32 0.03125, %v377_v25  ;;  %v569_v24 = vld [vmem:[%s5866_s3 + $0x18] sm:$0xff] }
  0xa1   : > { %v4656_v25 = vpack.c.bf16 %v569_v24, %v568_v23 }
  0xa2   : > { %v5147_v28 = vsub.f32 %v350_v0, %v382_v26  ;;  %v5149_v29 = vsub.f32 %v352_v1, %v384_v27  ;;  %v675_v26 = vld [vmem:[%s5867_s4] sm:$0xff]  ;;  %v676_v27 = vld [vmem:[%s5867_s4 + $0x8] sm:$0xff] }
  0xa3   : > { %v374_v30 = vpop.xlane.xlu0 %373  ;;  %v380_v31 = vpop.xlane.xlu1 %379 }
  0xa4   : > { %v383_v32 = vmul.f32 0.03125, %v374_v30  ;;  %v385_v33 = vmul.f32 0.03125, %v380_v31  ;;  %v390_v34 = vmul.f32 %v5147_v28, %v5147_v28  ;;  %v392_v35 = vmul.f32 %v5149_v29, %v5149_v29  ;;  %v812_v30 = vld [vmem:[%s5868_s5] sm:$0xff] }
  0xa5   : > { %v5230_v31 = vpack.c.bf16 %v676_v27, %v675_v26 }
  0xa6   : > { %v5155_v36 = vsub.f32 %v351_v2, %v383_v32  ;;  %v5157_v37 = vsub.f32 %v353_v5, %v385_v33  ;;  %v394_v38 = vsel %vm368_vm0, %v390_v34, 0.0  ;;  %v400_v41 = vsel %vm368_vm0, %v392_v35, 0.0  ;;  %v813_v32 = vld [vmem:[%s5868_s5 + $0x8] sm:$0xff]  ;;  %v814_v34 = vld [vmem:[%s5868_s5 + $0x10] sm:$0xff]  ;;  %v815_v35 = vld [vmem:[%s5868_s5 + $0x18] sm:$0xff] }
  0xa7   : > { %395 = vadd.xlane.f32.xlu0 %v394_v38  ;;  %v440_v39 = vpop.xlane.xlu0 %439  ;;  %v443_v40 = vpop.xlane.xlu1 %442  ;;  %v4668_v33 = vpack.c.bf16 %v813_v32, %v812_v30  ;;  %v4672_v38 = vpack.c.bf16 %v815_v35, %v814_v34  ;;  %v678_v34 = vld [vmem:[%s5867_s4 + $0x18] sm:$0xff] }
  0xa8   : > { %v462_v42 = vmul.f32 0.03125, %v440_v39  ;;  %v463_v43 = vmul.f32 0.03125, %v443_v40  ;;  %v391_v44 = vmul.f32 %v5155_v36, %v5155_v36  ;;  %v393_v45 = vmul.f32 %v5157_v37, %v5157_v37 }
  0xa9   : > { %4669 = vmatprep.subr.bf16.mxu0 %v4668_v33 }
  0xaa   : > { %v5165_v46 = vsub.f32 %v354_v8, %v462_v42  ;;  %v5167_v47 = vsub.f32 %v355_v9, %v463_v43  ;;  %v397_v48 = vsel %vm368_vm0, %v391_v44, 0.0  ;;  %v403_v51 = vsel %vm368_vm0, %v393_v45, 0.0  ;;  %4671 = vmatpush3.bf16.msra.mxu0 %v4668_v33  ;;  %v677_v33 = vld [vmem:[%s5867_s4 + $0x10] sm:$0xff] }
  0xab   : > { %401 = vadd.xlane.f32.xlu0 %v400_v41  ;;  %398 = vadd.xlane.f32.xlu1 %v397_v48  ;;  %v446_v49 = vpop.xlane.xlu0 %445  ;;  %v449_v50 = vpop.xlane.xlu1 %448  ;;  %v422_v41 = vlaneseq }
  0xac   : > { %v464_v52 = vmul.f32 0.03125, %v446_v49  ;;  %v465_v53 = vmul.f32 0.03125, %v449_v50  ;;  %v478_v54 = vmul.f32 %v5165_v46, %v5165_v46  ;;  %v479_v55 = vmul.f32 %v5167_v47, %v5167_v47  ;;  %4673 = vmatprep.subr.bf16.mxu0 %v4672_v38 }
  0xad   : > { %v5242_v49 = vshrl.u32 %v422_v41, 7 }
  0xae   : > { %v5175_v56 = vsub.f32 %v356_v12, %v464_v52  ;;  %v5177_v57 = vsub.f32 %v357_v13, %v465_v53  ;;  %v486_v58 = vsel %vm368_vm0, %v478_v54, 0.0  ;;  %v489_v61 = vsel %vm368_vm0, %v479_v55, 0.0  ;;  %4675 = vmatpush3.bf16.msra.mxu0 %v4672_v38 }
  0xaf   : > { %404 = vadd.xlane.f32.xlu1 %v403_v51  ;;  %487 = vadd.xlane.f32.xlu0 %v486_v58  ;;  %v452_v59 = vpop.xlane.xlu0 %451  ;;  %v455_v60 = vpop.xlane.xlu1 %454  ;;  %v424_v58 = vsub.s32 4, %v5242_v49 }
  0xb0   : > { %v466_v62 = vmul.f32 0.03125, %v452_v59  ;;  %v467_v63 = vmul.f32 0.03125, %v455_v60  ;;  %v480_v0 = vmul.f32 %v5175_v56, %v5175_v56  ;;  %v481_v1 = vmul.f32 %v5177_v57, %v5177_v57 }
  0xb2   : > { %v5185_v2 = vsub.f32 %v358_v16, %v466_v62  ;;  %v5187_v3 = vsub.f32 %v359_v17, %v467_v63  ;;  %v492_v4 = vsel %vm368_vm0, %v480_v0, 0.0  ;;  %v495_v7 = vsel %vm368_vm0, %v481_v1, 0.0 }
  0xb3   : > { %490 = vadd.xlane.f32.xlu1 %v489_v61  ;;  %493 = vadd.xlane.f32.xlu0 %v492_v4  ;;  %v458_v5 = vpop.xlane.xlu0 %457  ;;  %v461_v6 = vpop.xlane.xlu1 %460  ;;  %v5248_v61 = vld [vmem:[%s5870_s7] sm:$0xff]  ;;  %v432_v0 = vsub.s32 5, %v5242_v49 }
  0xb4   : > { %v468_v8 = vmul.f32 0.03125, %v458_v5  ;;  %v469_v9 = vmul.f32 0.03125, %v461_v6  ;;  %v482_v10 = vmul.f32 %v5185_v2, %v5185_v2  ;;  %v483_v11 = vmul.f32 %v5187_v3, %v5187_v3 }
  0xb5   : > { %v425_v5 = vrot.slane %v5248_v61, %v424_v58 }
  0xb6   : > { %v5196_v12 = vsub.f32 %v5139_v20, %v468_v8  ;;  %v5199_v13 = vsub.f32 %v5141_v21, %v469_v9  ;;  %v498_v14 = vsel %vm368_vm0, %v482_v10, 0.0  ;;  %v501_v15 = vsel %vm368_vm0, %v483_v11, 0.0  ;;  %v566_v20 = vld [vmem:[%s5866_s3] sm:$0xff]  ;;  %v567_v21 = vld [vmem:[%s5866_s3 + $0x8] sm:$0xff] }
  0xb7   : > { %496 = vadd.xlane.f32.xlu1 %v495_v7  ;;  %499 = vadd.xlane.f32.xlu0 %v498_v14  ;;  %v4652_v22 = vpack.c.bf16 %v567_v21, %v566_v20  ;;  %v433_v14 = vrot.slane %v5248_v61, %v432_v0 }
  0xb8   : > { %v484_v16 = vmul.f32 %v5196_v12, %v5196_v12  ;;  %v485_v17 = vmul.f32 %v5199_v13, %v5199_v13 }
  0xb9   : > { %4653 = vmatprep.subr.bf16.mxu1 %v4652_v22 }
  0xba   : > { %v504_v18 = vsel %vm368_vm0, %v484_v16, 0.0  ;;  %v507_v19 = vsel %vm368_vm0, %v485_v17, 0.0  ;;  %4655 = vmatpush3.bf16.msra.mxu1 %v4652_v22 }
  0xbb   : > { %502 = vadd.xlane.f32.xlu1 %v501_v15  ;;  %505 = vadd.xlane.f32.xlu0 %v504_v18 }
  0xbc   : > { %4657 = vmatprep.subr.bf16.mxu1 %v4656_v25 }
  0xbe   : > { %4659 = vmatpush3.bf16.msra.mxu1 %v4656_v25 }
  0xbf   : > { %508 = vadd.xlane.f32.xlu1 %v507_v19  ;;  %4661 = vmatprep.subr.bf16.mxu1 %v5230_v31  ;;  %v544_v19 = vsub.s32 6, %v5242_v49 }
  0xc1   : > { %v5266_v38 = vrot.slane %v5248_v61, %v544_v19 }
 0x134   : > { %v396_v39 = vpop.xlane.xlu0 %395 }
 0x135   : > { %v406_v40 = vmul.f32 0.03125, %v396_v39 }
 0x137   : > { %v410_v42 = vadd.f32 1e-05, %v406_v40 }
 0x138   : > { %v399_v43 = vpop.xlane.xlu1 %398  ;;  %v402_v44 = vpop.xlane.xlu0 %401 }
 0x139   : > { %4933 = vrsqrt.f32 %v410_v42  ;;  %v407_v45 = vmul.f32 0.03125, %v399_v43  ;;  %v408_v48 = vmul.f32 0.03125, %v402_v44 }
 0x13b   : > { %v411_v50 = vadd.f32 1e-05, %v407_v45  ;;  %v412_v51 = vadd.f32 1e-05, %v408_v48  ;;  %v4664_v45 = vpack.c.bf16 %v678_v34, %v677_v33 }
 0x13c   : > { %v405_v52 = vpop.xlane.xlu1 %404  ;;  %v488_v53 = vpop.xlane.xlu0 %487 }
 0x13d   : > { %4935 = vrsqrt.f32 %v411_v50  ;;  %v409_v54 = vmul.f32 0.03125, %v405_v52  ;;  %v510_v55 = vmul.f32 0.03125, %v488_v53 }
 0x13e   : > { %4937 = vrsqrt.f32 %v412_v51 }
 0x13f   : > { %v413_v59 = vadd.f32 1e-05, %v409_v54  ;;  %v518_v60 = vadd.f32 1e-05, %v510_v55 }
 0x140   : > { %v491_v62 = vpop.xlane.xlu1 %490  ;;  %v494_v63 = vpop.xlane.xlu0 %493 }
 0x141   : > { %4939 = vrsqrt.f32 %v413_v59  ;;  %v511_v1 = vmul.f32 0.03125, %v491_v62  ;;  %v512_v4 = vmul.f32 0.03125, %v494_v63 }
 0x142   : > { %4941 = vrsqrt.f32 %v518_v60 }
 0x143   : > { %v4934_v6 = vpop.eup %4933  ;;  %v519_v7 = vadd.f32 1e-05, %v511_v1  ;;  %v520_v8 = vadd.f32 1e-05, %v512_v4 }
 0x144   : > { %v497_v9 = vpop.xlane.xlu1 %496  ;;  %v500_v10 = vpop.xlane.xlu0 %499  ;;  %v418_v11 = vmul.f32 %v4934_v6, %v5147_v28  ;;  %v556_v28 = vsub.s32 7, %v5242_v49 }
 0x145   : > { %4943 = vrsqrt.f32 %v519_v7  ;;  %v513_v15 = vmul.f32 0.03125, %v497_v9  ;;  %v514_v16 = vmul.f32 0.03125, %v500_v10 }
 0x146   : > { %4945 = vrsqrt.f32 %v520_v8  ;;  %v426_v17 = vmul.f32 %v425_v5, %v418_v11  ;;  %v557_v48 = vrot.slane %v5248_v61, %v556_v28 }
 0x147   : > { %v4936_v18 = vpop.eup %4935  ;;  %v521_v20 = vadd.f32 1e-05, %v513_v15  ;;  %v522_v21 = vadd.f32 1e-05, %v514_v16 }
 0x148   : > { %v4938_v22 = vpop.eup %4937  ;;  %v503_v23 = vpop.xlane.xlu1 %502  ;;  %v434_v25 = vadd.f32 %v433_v14, %v426_v17  ;;  %v419_v26 = vmul.f32 %v4936_v18, %v5155_v36 }
 0x149   : > { %v506_v24 = vpop.xlane.xlu0 %505  ;;  %4947 = vrsqrt.f32 %v521_v20  ;;  %v515_v27 = vmul.f32 0.03125, %v503_v23  ;;  %v420_v32 = vmul.f32 %v4938_v22, %v5149_v29  ;;  %v5050_v20 = vmov 0.0|0.0  }
 0x14a   : > { %v516_v30 = vmul.f32 0.03125, %v506_v24  ;;  %4949 = vrsqrt.f32 %v522_v21  ;;  %4368 = vmatprep.mubr.msk.f32.mxu1 %vm368_vm0, %v434_v25  ;;  %v427_v35 = vmul.f32 %v425_v5, %v419_v26  ;;  %4680 = vmatprep.subr.bf16.mxu0 %v5050_v20  ;;  %v681_v23 = vsub.s32 1, %v5242_v49 }
 0x14b   : > { %v4940_v36 = vpop.eup %4939  ;;  %v523_v39 = vadd.f32 1e-05, %v515_v27  ;;  %v428_v41 = vmul.f32 %v425_v5, %v420_v32  ;;  %v818_v24 = vsub.s32 2, %v5242_v49 }
 0x14c   : > { %v524_v40 = vadd.f32 1e-05, %v516_v30  ;;  %v4942_v29 = vpop.eup %4941  ;;  %v509_v42 = vpop.xlane.xlu1 %508  ;;  %v435_v43 = vadd.f32 %v433_v14, %v427_v35  ;;  %v421_v44 = vmul.f32 %v4940_v36, %v5157_v37  ;;  %v682_v28 = vrot.slane %v5248_v61, %v681_v23 }
 0x14d   : > { %4951 = vrsqrt.f32 %v523_v39  ;;  %v517_v50 = vmul.f32 0.03125, %v509_v42  ;;  %v436_v51 = vadd.f32 %v433_v14, %v428_v41  ;;  %v534_v52 = vmul.f32 %v4942_v29, %v5165_v46 }
 0x14e   : > { %4953 = vrsqrt.f32 %v524_v40  ;;  %4369 = vmatmul.mubr.msk.f32.vlgmr.msra.gmra.mrb[0].mxu1 %vm368_vm0, %v435_v43  ;;  %v429_v53 = vmul.f32 %v425_v5, %v421_v44  ;;  %v819_v27 = vrot.slane %v5248_v61, %v818_v24  ;;  %v5323_v30 = vsub.s32 0, %v5242_v49 }
 0x14f   : > { %v4944_v54 = vpop.eup %4943  ;;  %v525_v55 = vadd.f32 1e-05, %v517_v50  ;;  %4371 = vmatprep.mubr.msk.f32.mxu1 %vm368_vm0, %v436_v51  ;;  %4663 = vmatpush3.bf16.msra.mxu1 %v5230_v31  ;;  %v546_v37 = vmul.f32 %v5266_v38, %v534_v52 }
 0x150   : > { %v4946_v58 = vpop.eup %4945  ;;  %v535_v59 = vmul.f32 %v4944_v54, %v5167_v47  ;;  %v437_v60 = vadd.f32 %v433_v14, %v429_v53  ;;  %4665 = vmatprep.subr.bf16.mxu1 %v4664_v45  ;;  %v573_v41 = vrot.slane %v5248_v61, %v5323_v30 }
 0x151   : > { %4955 = vrsqrt.f32 %v525_v55  ;;  %v558_v62 = vadd.f32 %v557_v48, %v546_v37  ;;  %v536_v46 = vmul.f32 %v4946_v58, %v5175_v56 }
 0x152   : > { %v547_v63 = vmul.f32 %v5266_v38, %v535_v59  ;;  %4372 = vmatmul.mubr.msk.f32.gmra.mrb[2].mxu1 %vm368_vm0, %v437_v60 }
 0x153   : > { %v4948_v0 = vpop.eup %4947  ;;  %4402 = vmatprep.mubr.msk.f32.mxu0 %vm368_vm0, %v558_v62  ;;  %4667 = vmatpush3.bf16.msra.mxu1 %v4664_v45  ;;  %v548_v31 = vmul.f32 %v5266_v38, %v536_v46 }
 0x154   : > { %v4950_v1 = vpop.eup %4949  ;;  %4382 = vmatprep.mubr.msk.f32.mxu1 %vm368_vm0, %v558_v62  ;;  %v559_v47 = vadd.f32 %v557_v48, %v547_v63  ;;  %v537_v4 = vmul.f32 %v4948_v0, %v5177_v57  ;;  %4676 = vmatprep.subr.bf16.mxu1 %v5050_v20 }
 0x155   : > { %v560_v5 = vadd.f32 %v557_v48, %v548_v31  ;;  %v538_v6 = vmul.f32 %v4950_v1, %v5185_v2 }
 0x156   : > { %4383 = vmatmul.mubr.msk.f32.vlgmr.msra.gmra.mrb[4].mxu1 %vm368_vm0, %v559_v47  ;;  %4403 = vmatmul.mubr.msk.f32.vlgmr.msra.gmra.mrb[0].mxu0 %vm368_vm0, %v559_v47  ;;  %v549_v56 = vmul.f32 %v5266_v38, %v537_v4 }
 0x157   : > { %v4952_v7 = vpop.eup %4951  ;;  %4385 = vmatprep.mubr.msk.f32.mxu1 %vm368_vm0, %v560_v5  ;;  %4405 = vmatprep.mubr.msk.f32.mxu0 %vm368_vm0, %v560_v5  ;;  %v550_v8 = vmul.f32 %v5266_v38, %v538_v6 }
 0x158   : > { %v4954_v9 = vpop.eup %4953  ;;  %v561_v10 = vadd.f32 %v557_v48, %v549_v56  ;;  %v539_v57 = vmul.f32 %v4952_v7, %v5187_v3 }
 0x159   : > { %v562_v11 = vadd.f32 %v557_v48, %v550_v8  ;;  %v540_v2 = vmul.f32 %v4954_v9, %v5196_v12 }
 0x15a   : > { %4386 = vmatmul.mubr.msk.f32.gmra.mrb[6].mxu1 %vm368_vm0, %v561_v10  ;;  %4406 = vmatmul.mubr.msk.f32.gmra.mrb[2].mxu0 %vm368_vm0, %v561_v10  ;;  %v551_v14 = vmul.f32 %v5266_v38, %v539_v57 }
 0x15b   : > { %v4956_v15 = vpop.eup %4955  ;;  %4388 = vmatprep.mubr.msk.f32.mxu1 %vm368_vm0, %v562_v11  ;;  %4408 = vmatprep.mubr.msk.f32.mxu0 %vm368_vm0, %v562_v11  ;;  %v552_v16 = vmul.f32 %v5266_v38, %v540_v2 }
 0x15c   : > { %v563_v17 = vadd.f32 %v557_v48, %v551_v14  ;;  %v541_v18 = vmul.f32 %v4956_v15, %v5199_v13  ;;  %v5052_v13 = vmov 0.0  }
 0x15d   : > { %v564_v3 = vadd.f32 %v557_v48, %v552_v16 }
 0x15e   : > { %4389 = vmatmul.mubr.msk.f32.gmra.mrb[8].mxu1 %vm368_vm0, %v563_v17  ;;  %4409 = vmatmul.mubr.msk.f32.gmra.mrb[4].mxu0 %vm368_vm0, %v563_v17  ;;  %v553_v12 = vmul.f32 %v5266_v38, %v541_v18 }
 0x15f   : > { %4391 = vmatprep.mubr.msk.f32.mxu1 %vm368_vm0, %v564_v3  ;;  %4411 = vmatprep.mubr.msk.f32.mxu0 %vm368_vm0, %v564_v3 }
 0x160   : > { %v565_v19 = vadd.f32 %v557_v48, %v553_v12 }
 0x162   : > { %4392 = vmatmul.mubr.msk.f32.gmra.mrb[10].mxu1 %vm368_vm0, %v565_v19  ;;  %4412 = vmatmul.mubr.msk.f32.gmra.mrb[6].mxu0 %vm368_vm0, %v565_v19 }
 0x163   : > { %4418 = vmatprep.mubr.msk.f32.mxu1 %vm5051_vm1, %v5052_v13  ;;  %4425 = vmatprep.mubr.msk.f32.mxu0 %vm5051_vm1, %v5052_v13 }
 0x221   : > { %v4370_v21 = vpop.f32.mrb[0].mxu1 }
 0x222   : > { %v652_v22 = vpop.f32.mrb[1].mxu1  ;;  %v658_v6 = vadd.f32 %v4370_v21, %v573_v41 }
 0x223   : > { %v653_v37 = vadd.f32 %v652_v22, %v573_v41 }
 0x224   : > { %v5379_v3 = vmul.f32 0.17677669, %v658_v6 }
 0x225   : > { %v5314_v25 = vpop.f32.mrb[2].mxu1  ;;  %v5362_v56 = vmul.f32 0.17677669, %v653_v37 }
 0x226   : > { %v662_v26 = vpop.f32.mrb[3].mxu1 }
 0x227   : > { %v663_v12 = vadd.f32 %v662_v26, %v573_v41  ;;  %v668_v26 = vadd.f32 %v5314_v25, %v573_v41  ;;  %v5416_v25 = vld [vmem:[%s342_s28] sm:$0x1] }
 0x229   : > { %v4384_v32 = vpop.f32.mrb[4].mxu1  ;;  %v4404_v33 = vpop.f32.mrb[0].mxu0 }
 0x22a   : > { %v779_v34 = vadd.f32 %v4384_v32, %v682_v28  ;;  %v5325_v35 = vadd.f32 %v4404_v33, %v819_v27  ;;  %v773_v36 = vpop.f32.mrb[5].mxu1  ;;  %v886_v38 = vpop.f32.mrb[1].mxu0  ;;  %v5404_v32 = vmul.f32 0.17677669, %v668_v26  ;;  %v4150_v33 = vadd.f32 -1.0, %v5416_v25 }
 0x22b   : > { %v774_v39 = vadd.f32 %v773_v36, %v682_v28  ;;  %v5327_v40 = vadd.f32 %v886_v38, %v819_v27  ;;  %v5422_v38 = vld [vmem:[%s342_s28 + $0x2] sm:$0x1] }
 0x22c   : > { %v4152_v41 = vadd.f32 -1.0, %v5422_v38 }
 0x22d   : > { %v4677_v42 = vpack.c.bf16 %v779_v34, %v774_v39  ;;  %v4387_v43 = vpop.f32.mrb[6].mxu1  ;;  %v4407_v44 = vpop.f32.mrb[2].mxu0  ;;  %v4693_v45 = vpack.c.bf16 %v5325_v35, %v5327_v40  ;;  %v5339_v48 = vpack.i.bf16 %v779_v34, %v774_v39  ;;  %v5343_v50 = vpack.i.bf16 %v5325_v35, %v5327_v40  ;;  %v5419_v34 = vld [vmem:[%s342_s28 + $0x1] sm:$0x1] }
 0x22e   : > { %v789_v51 = vadd.f32 %v4387_v43, %v682_v28  ;;  %v5345_v61 = vadd.f32 %v4407_v44, %v819_v27  ;;  %v783_v52 = vpop.f32.mrb[7].mxu1  ;;  %v896_v53 = vpop.f32.mrb[3].mxu0  ;;  %v929_v35 = vmul.f32 1e+12, %v4150_v33  ;;  %v4151_v36 = vadd.f32 -1.0, %v5419_v34 }
 0x22f   : > { %v784_v54 = vadd.f32 %v783_v52, %v682_v28  ;;  %v5347_v55 = vadd.f32 %v896_v53, %v819_v27  ;;  %4679 = vmatpush3.bf16.xpose.msk.msra.mxu1 %vm5333_vm3, %v4677_v42  ;;  %v5428_v42 = vld [vmem:[%s342_s28 + $0x3] sm:$0x1]  ;;  %v931_v52 = vmul.f32 1e+12, %v4152_v41 }
 0x230   : > { %4684 = vmatprep.subr.bf16.mxu1 %v5050_v20  ;;  %v5425_v39 = vrot.slane %v929_v35, %v5323_v30  ;;  %v930_v40 = vmul.f32 1e+12, %v4151_v36  ;;  %v4153_v53 = vadd.f32 -1.0, %v5428_v42 }
 0x231   : > { %v4681_v58 = vpack.c.bf16 %v789_v51, %v784_v54  ;;  %v4390_v59 = vpop.f32.mrb[8].mxu1  ;;  %v4410_v60 = vpop.f32.mrb[4].mxu0  ;;  %v5352_v62 = vpack.i.bf16 %v789_v51, %v784_v54  ;;  %v4696_v46 = vpack.c.bf16 %v5345_v61, %v5347_v55  ;;  %v5358_v63 = vpack.i.bf16 %v5345_v61, %v5347_v55 }
 0x232   : > { %v799_v0 = vadd.f32 %v4390_v59, %v682_v28  ;;  %v912_v31 = vadd.f32 %v4410_v60, %v819_v27  ;;  %v793_v1 = vpop.f32.mrb[9].mxu1  ;;  %v906_v47 = vpop.f32.mrb[5].mxu0  ;;  %v5432_v51 = vrot.slane %v930_v40, %v5323_v30  ;;  %v5438_v60 = vrot.slane %v931_v52, %v5323_v30 }
 0x233   : > { %v794_v4 = vadd.f32 %v793_v1, %v682_v28  ;;  %v907_v5 = vadd.f32 %v906_v47, %v819_v27  ;;  %4683 = vmatpush3.bf16.xpose.msk.msra.mxu0 %vm5333_vm3, %v4681_v58 }
 0x234   : > { %4688 = vmatprep.subr.bf16.mxu0 %v5050_v20 }
 0x235   : > { %v4685_v7 = vpack.c.bf16 %v799_v0, %v794_v4  ;;  %v4393_v8 = vpop.f32.mrb[10].mxu1  ;;  %v4413_v9 = vpop.f32.mrb[6].mxu0  ;;  %v4699_v10 = vpack.c.bf16 %v912_v31, %v907_v5  ;;  %v5365_v57 = vpack.i.bf16 %v799_v0, %v794_v4  ;;  %v5367_v11 = vpack.i.bf16 %v912_v31, %v907_v5 }
 0x236   : > { %v809_v2 = vadd.f32 %v4393_v8, %v682_v28  ;;  %v5369_v14 = vadd.f32 %v4413_v9, %v819_v27  ;;  %v803_v15 = vpop.f32.mrb[11].mxu1  ;;  %v916_v16 = vpop.f32.mrb[7].mxu0  ;;  %4419 = vmatmul.mubr.msk.f32.vlgmr.msra.gmra.mrb[12].mxu1 %vm981_vm2, %v5362_v56  ;;  %v932_v0 = vmul.f32 1e+12, %v4153_v53 }
 0x237   : > { %v804_v17 = vadd.f32 %v803_v15, %v682_v28  ;;  %v5373_v18 = vadd.f32 %v916_v16, %v819_v27  ;;  %4687 = vmatpush3.bf16.xpose.msk.msra.mxu1 %vm5333_vm3, %v4685_v7  ;;  %4432 = vmatprep.mubr.msk.f32.mxu1 %vm5051_vm1, %v5052_v13  ;;  %v5397_v27 = vmul.f32 0.17677669, %v663_v12 }
 0x238   : > { %4692 = vmatprep.subr.bf16.mxu1 %v5050_v20  ;;  %v5443_v5 = vrot.slane %v932_v0, %v5323_v30 }
 0x239   : > { %v4689_v19 = vpack.c.bf16 %v809_v2, %v804_v17  ;;  %v5382_v21 = vpack.i.bf16 %v809_v2, %v804_v17  ;;  %v4702_v22 = vpack.c.bf16 %v5369_v14, %v5373_v18  ;;  %v5388_v28 = vpack.i.bf16 %v5369_v14, %v5373_v18 }
 0x23a   : > { %4426 = vmatmul.mubr.msk.f32.vlgmr.msra.gmra.mrb[8].mxu0 %vm981_vm2, %v5379_v3 }
 0x23b   : > { %4691 = vmatpush3.bf16.xpose.msk.msra.mxu0 %vm5333_vm3, %v4689_v19  ;;  %4439 = vmatprep.mubr.msk.f32.mxu0 %vm5051_vm1, %v5052_v13 }
 0x23c   : > { %4698 = vmatprep.subr.bf16.mxu0 %v5050_v20 }
 0x23e   : > { %4433 = vmatmul.mubr.msk.f32.vlgmr.msra.gmra.mrb[14].mxu1 %vm981_vm2, %v5397_v27 }
 0x23f   : > { %4694 = vmatpush3.bf16.msra.mxu1 %v4693_v45  ;;  %4446 = vmatprep.mubr.msk.f32.mxu1 %vm5051_vm1, %v5052_v13 }
 0x240   : > { %4695 = vmatprep.subr.bf16.mxu1 %v5050_v20 }
 0x242   : > { %4440 = vmatmul.mubr.msk.f32.vlgmr.msra.gmra.mrb[10].mxu0 %vm981_vm2, %v5404_v32 }
 0x243   : > { %4700 = vmatpush3.bf16.msra.mxu0 %v4699_v10  ;;  %4460 = vmatprep.mubr.msk.f32.mxu0 %vm5051_vm1, %v5052_v13 }
 0x244   : > { %4704 = vmatprep.subr.bf16.mxu0 %v5050_v20 }
 0x309   : > { %v1057_v43 = vpop.f32.mrb[12].mxu1 }
 0x30a   : > { %v1058_v44 = vadd.f32 %v1057_v43, %v5425_v39  ;;  %v4420_v45 = vpop.f32.mrb[13].mxu1 }
 0x30c   : > { %v1299_v54 = vsel %vm1298_vm4, %v1058_v44, -inf }
 0x30d   : > { %v1136_v37 = vpop.f32.mrb[8].mxu0  ;;  %1300 = vmax.xlane.f32.xlu0 %v1299_v54 }
 0x30e   : > { %v1137_v58 = vadd.f32 %v1136_v37, %v5432_v51  ;;  %v4427_v59 = vpop.f32.mrb[9].mxu0 }
 0x310   : > { %v1302_v31 = vsel %vm1298_vm4, %v1137_v58, -inf }
 0x311   : > { %1303 = vmax.xlane.f32.xlu1 %v1302_v31  ;;  %v1215_v1 = vpop.f32.mrb[14].mxu1 }
 0x312   : > { %v1216_v47 = vadd.f32 %v1215_v1, %v5438_v60  ;;  %v4434_v4 = vpop.f32.mrb[15].mxu1  ;;  %v5470_v1 = vrot.slane %v5416_v25, %v5323_v30  ;;  %v5485_v25 = vrot.slane %v5422_v38, %v5323_v30 }
 0x314   : > { %v1305_v6 = vsel %vm1298_vm4, %v1216_v47, -inf }
 0x315   : > { %1306 = vmax.xlane.f32.xlu0 %v1305_v6  ;;  %v1294_v7 = vpop.f32.mrb[10].mxu0 }
 0x316   : > { %v1295_v8 = vadd.f32 %v1294_v7, %v5443_v5  ;;  %v4441_v9 = vpop.f32.mrb[11].mxu0  ;;  %v5474_v7 = vrot.slane %v5419_v34, %v5323_v30 }
 0x318   : > { %v1308_v10 = vsel %vm1298_vm4, %v1295_v8, -inf }
 0x319   : > { %1309 = vmax.xlane.f32.xlu1 %v1308_v10 }
 0x39a   : > { %v1301_v2 = vpop.xlane.xlu0 %1300 }
 0x39b   : > { %v1311_v15 = vsub.f32 %v1058_v44, %v1301_v2 }
 0x39d   : > { %v1315_v16 = vmul.f32 1.442695, %v1311_v15 }
 0x39e   : > { %v1304_v17 = vpop.xlane.xlu1 %1303 }
 0x39f   : > { %4957 = vpow2.f32 %v1315_v16  ;;  %v1312_v12 = vsub.f32 %v1137_v58, %v1304_v17 }
 0x3a1   : > { %v1317_v19 = vmul.f32 1.442695, %v1312_v12 }
 0x3a2   : > { %v1307_v26 = vpop.xlane.xlu0 %1306 }
 0x3a3   : > { %4959 = vpow2.f32 %v1317_v19  ;;  %v1313_v33 = vsub.f32 %v1216_v47, %v1307_v26 }
 0x3a5   : > { %v1319_v35 = vmul.f32 1.442695, %v1313_v33 }
 0x3a6   : > { %v1310_v52 = vpop.xlane.xlu1 %1309 }
 0x3a7   : > { %4961 = vpow2.f32 %v1319_v35  ;;  %v1314_v53 = vsub.f32 %v1295_v8, %v1310_v52  ;;  %v5514_v35 = vrot.slane %v5428_v42, %v5323_v30 }
 0x3a9   : > { %v4958_v36 = vpop.eup %4957  ;;  %v1321_v54 = vmul.f32 1.442695, %v1314_v53 }
 0x3aa   : > { %v1323_v40 = vsel %vm1298_vm4, %v4958_v36, 0.0 }
 0x3ab   : > { %1324 = vadd.xlane.f32.xlu0 %v1323_v40  ;;  %4963 = vpow2.f32 %v1321_v54 }
 0x3ad   : > { %v4960_v41 = vpop.eup %4959 }
 0x3ae   : > { %v1326_v43 = vsel %vm1298_vm4, %v4960_v41, 0.0 }
 0x3af   : > { %1327 = vadd.xlane.f32.xlu1 %v1326_v43 }
 0x3b1   : > { %v4962_v45 = vpop.eup %4961 }
 0x3b2   : > { %v1329_v44 = vsel %vm1298_vm4, %v4962_v45, 0.0 }
 0x3b3   : > { %1330 = vadd.xlane.f32.xlu0 %v1329_v44 }
 0x3b5   : > { %v4964_v37 = vpop.eup %4963 }
 0x3b6   : > { %v1332_v58 = vsel %vm1298_vm4, %v4964_v37, 0.0 }
 0x3c0   : > { %4819 = vrot.lane.b32.xlu1 %v5352_v62, %s5053_s30 }
 0x3c4   : > { %1639 = vrot.lane.b32.xlu1 %v5362_v56, %s5053_s30 }
 0x3c8   : > { %4824 = vrot.lane.b32.xlu1 %v5365_v57, %s5053_s30 }
 0x3c9   : > { %4814 = vrot.lane.b32.xlu0 %v5339_v48, %s5053_s30 }
 0x3cd   : > { %1721 = vrot.lane.b32.xlu0 %v5379_v3, %s5053_s30 }
 0x3d1   : > { %1803 = vrot.lane.b32.xlu0 %v5397_v27, %s5053_s30 }
 0x3ec   : > { %1333 = vadd.xlane.f32.xlu1 %v1332_v58 }
 0x3fd   : > { %4829 = vrot.lane.b32.xlu1 %v5382_v21, %s5053_s30 }
 0x401   : > { %1885 = vrot.lane.b32.xlu1 %v5404_v32, %s5053_s30 }
 0x438   : > { %v1325_v59 = vpop.xlane.xlu0 %1324 }
 0x439   : > { %4965 = vrcp.f32 %v1325_v59 }
 0x43c   : > { %v1328_v0 = vpop.xlane.xlu1 %1327 }
 0x43d   : > { %4967 = vrcp.f32 %v1328_v0 }
 0x440   : > { %v1331_v31 = vpop.xlane.xlu0 %1330  ;;  %v4820_v6 = vpop.permute.xlu1 %4819 }
 0x441   : > { %4969 = vrcp.f32 %v1331_v31  ;;  %v4822_v40 = vunpack.i.h.bf16 %v4820_v6 }
 0x443   : > { %v4966_v47 = vpop.eup %4965 }
 0x444   : > { %v1339_v4 = vmul.f32 %v4966_v47, %v4958_v36  ;;  %v4815_v2 = vpop.permute.xlu0 %4814  ;;  %v1640_v34 = vpop.permute.xlu1 %1639 }
 0x445   : > { %v4817_v17 = vunpack.i.h.bf16 %v4815_v2  ;;  %v4816_v12 = vunpack.i.l.bf16 %v4815_v2 }
 0x446   : > { %v1343_v8 = vmul.f32 %v1339_v4, %v5470_v1 }
 0x447   : > { %v4968_v9 = vpop.eup %4967  ;;  %v4705_v55 = vpack.c.bf16 %v4817_v17, %v4816_v12 }
 0x448   : > { %v1340_v10 = vmul.f32 %v4968_v9, %v4960_v41  ;;  %4447 = vmatmul.mubr.msk.f32.vlgmr.msra.gmra.mrb[16].mxu1 %vm1298_vm4, %v1343_v8  ;;  %v1722_v38 = vpop.permute.xlu0 %1721  ;;  %v4821_v41 = vunpack.i.l.bf16 %v4820_v6 }
 0x449   : > { %4697 = vmatpush3.bf16.msra.mxu1 %v4696_v46  ;;  %4453 = vmatprep.mubr.msk.f32.mxu1 %vm5051_vm1, %v5052_v13  ;;  %v4825_v46 = vpop.permute.xlu1 %4824 }
 0x44a   : > { %4701 = vmatprep.subr.bf16.mxu1 %v5050_v20  ;;  %v1344_v15 = vmul.f32 %v1340_v10, %v5474_v7  ;;  %v4827_v14 = vunpack.i.h.bf16 %v4825_v46  ;;  %v4826_v18 = vunpack.i.l.bf16 %v4825_v46  ;;  %v4709_v44 = vpack.c.bf16 %v4822_v40, %v4821_v41 }
 0x44b   : > { %v4970_v16 = vpop.eup %4969 }
 0x44c   : > { %v1341_v19 = vmul.f32 %v4970_v16, %v4962_v45  ;;  %4454 = vmatmul.mubr.msk.f32.vlgmr.msra.gmra.mrb[18].mxu1 %vm1298_vm4, %v1344_v15  ;;  %v1804_v26 = vpop.permute.xlu0 %1803 }
 0x44d   : > { %4703 = vmatpush3.bf16.msra.mxu1 %v4702_v22  ;;  %4467 = vmatprep.mubr.msk.f32.mxu1 %vm5051_vm1, %v5052_v13  ;;  %v4713_v22 = vpack.c.bf16 %v4827_v14, %v4826_v18 }
 0x44e   : > { %v1345_v61 = vmul.f32 %v1341_v19, %v5485_v25  ;;  %4708 = vmatprep.subr.bf16.mxu1 %v5050_v20 }
 0x450   : > { %4461 = vmatmul.mubr.msk.f32.vlgmr.msra.gmra.mrb[12].mxu0 %vm1298_vm4, %v1345_v61 }
 0x451   : > { %4707 = vmatpush3.bf16.xpose.msk.msra.mxu0 %vm5333_vm3, %v4705_v55  ;;  %4474 = vmatprep.mubr.msk.f32.mxu0 %vm5051_vm1, %v5052_v13 }
 0x452   : > { %4712 = vmatprep.subr.bf16.mxu0 %v5050_v20 }
 0x458   : > { %4475 = vmatmul.mubr.msk.f32.vlgmr.msra.gmra.mrb[14].mxu0 %vm981_vm2, %v1640_v34 }
 0x459   : > { %4715 = vmatpush3.bf16.xpose.msk.msra.mxu0 %vm5333_vm3, %v4713_v22  ;;  %4488 = vmatprep.mubr.msk.f32.mxu0 %vm5051_vm1, %v5052_v13 }
 0x45a   : > { %4720 = vmatprep.subr.bf16.mxu0 %v5050_v20 }
 0x460   : > { %4489 = vmatmul.mubr.msk.f32.vlgmr.msra.gmra.mrb[16].mxu0 %vm981_vm2, %v1804_v26 }
 0x461   : > { %4502 = vmatprep.mubr.msk.f32.mxu0 %vm5051_vm1, %v5052_v13 }
 0x479   : > { %v1334_v33 = vpop.xlane.xlu1 %1333 }
 0x47a   : > { %4971 = vrcp.f32 %v1334_v33 }
 0x47d   : > { %v4830_v52 = vpop.permute.xlu1 %4829 }
 0x47e   : > { %v4832_v42 = vunpack.i.h.bf16 %v4830_v52  ;;  %v4831_v53 = vunpack.i.l.bf16 %v4830_v52 }
 0x480   : > { %v4717_v54 = vpack.c.bf16 %v4832_v42, %v4831_v53 }
 0x484   : > { %v4972_v36 = vpop.eup %4971 }
 0x485   : > { %v1342_v43 = vmul.f32 %v4972_v36, %v4964_v37  ;;  %v1886_v37 = vpop.permute.xlu1 %1885 }
 0x487   : > { %v1346_v45 = vmul.f32 %v1342_v43, %v5514_v35 }
 0x489   : > { %4468 = vmatmul.mubr.msk.f32.vlgmr.msra.gmra.mrb[20].mxu1 %vm1298_vm4, %v1346_v45 }
 0x48a   : > { %4711 = vmatpush3.bf16.xpose.msk.msra.mxu1 %vm5333_vm3, %v4709_v44  ;;  %4481 = vmatprep.mubr.msk.f32.mxu1 %vm5051_vm1, %v5052_v13 }
 0x48b   : > { %4716 = vmatprep.subr.bf16.mxu1 %v5050_v20 }
 0x491   : > { %4482 = vmatmul.mubr.msk.f32.vlgmr.msra.gmra.mrb[22].mxu1 %vm981_vm2, %v1722_v38 }
 0x492   : > { %4719 = vmatpush3.bf16.xpose.msk.msra.mxu1 %vm5333_vm3, %v4717_v54  ;;  %4495 = vmatprep.mubr.msk.f32.mxu1 %vm5051_vm1, %v5052_v13 }
 0x493   : > { %4723 = vmatprep.subr.bf16.mxu1 %v5050_v20 }
 0x499   : > { %4496 = vmatmul.mubr.msk.f32.vlgmr.msra.gmra.mrb[24].mxu1 %vm981_vm2, %v1886_v37 }
 0x49a   : > { %4509 = vmatprep.mubr.msk.f32.mxu1 %vm5051_vm1, %v5052_v13 }
 0x51b   : > { %v5532_v58 = vpop.f32.mrb[16].mxu1 }
 0x51c   : > { %v4448_v59 = vpop.f32.mrb[17].mxu1 }
 0x51f   : > { %v5534_v0 = vpop.f32.mrb[18].mxu1 }
 0x520   : > { %v4455_v31 = vpop.f32.mrb[19].mxu1 }
 0x523   : > { %v5536_v47 = vpop.f32.mrb[12].mxu0 }
 0x524   : > { %v4462_v4 = vpop.f32.mrb[13].mxu0 }
 0x52b   : > { %v1717_v6 = vpop.f32.mrb[14].mxu0 }
 0x52c   : > { %v1718_v8 = vadd.f32 %v1717_v6, %v5425_v39  ;;  %v4476_v9 = vpop.f32.mrb[15].mxu0 }
 0x52e   : > { %v1967_v10 = vsel %vm1298_vm4, %v1718_v8, -inf }
 0x52f   : > { %1968 = vmax.xlane.f32.xlu0 %v1967_v10 }
 0x533   : > { %v1881_v2 = vpop.f32.mrb[16].mxu0 }
 0x534   : > { %v1882_v34 = vadd.f32 %v1881_v2, %v5438_v60  ;;  %v4490_v15 = vpop.f32.mrb[17].mxu0 }
 0x536   : > { %v1973_v16 = vsel %vm1298_vm4, %v1882_v34, -inf }
 0x537   : > { %1974 = vmax.xlane.f32.xlu0 %v1973_v16 }
 0x55c   : > { %v5542_v17 = vpop.f32.mrb[20].mxu1 }
 0x55d   : > { %v4469_v12 = vpop.f32.mrb[21].mxu1 }
 0x564   : > { %v1799_v19 = vpop.f32.mrb[22].mxu1 }
 0x565   : > { %v1800_v61 = vadd.f32 %v1799_v19, %v5432_v51  ;;  %v4483_v55 = vpop.f32.mrb[23].mxu1 }
 0x567   : > { %v1970_v46 = vsel %vm1298_vm4, %v1800_v61, -inf }
 0x568   : > { %1971 = vmax.xlane.f32.xlu1 %v1970_v46 }
 0x56c   : > { %v1963_v14 = vpop.f32.mrb[24].mxu1 }
 0x56d   : > { %v1964_v18 = vadd.f32 %v1963_v14, %v5443_v5  ;;  %v4497_v22 = vpop.f32.mrb[25].mxu1 }
 0x56f   : > { %v1976_v38 = vsel %vm1298_vm4, %v1964_v18, -inf }
 0x570   : > { %1977 = vmax.xlane.f32.xlu0 %v1976_v38 }
 0x579   : > { %4839 = vrot.lane.b32.xlu1 %v5358_v63, %s5053_s30 }
 0x57d   : > { %4844 = vrot.lane.b32.xlu1 %v5367_v11, %s5053_s30 }
 0x581   : > { %4849 = vrot.lane.b32.xlu1 %v5388_v28, %s5053_s30 }
 0x5bc   : > { %v1969_v26 = vpop.xlane.xlu0 %1968 }
 0x5bd   : > { %v1979_v33 = vsub.f32 %v1718_v8, %v1969_v26 }
 0x5bf   : > { %v1983_v36 = vmul.f32 1.442695, %v1979_v33 }
 0x5c1   : > { %4973 = vpow2.f32 %v1983_v36 }
 0x5c4   : > { %v1975_v43 = vpop.xlane.xlu0 %1974 }
 0x5c5   : > { %v1981_v45 = vsub.f32 %v1882_v34, %v1975_v43 }
 0x5c7   : > { %v1987_v44 = vmul.f32 1.442695, %v1981_v45 }
 0x5c9   : > { %4975 = vpow2.f32 %v1987_v44 }
 0x5cb   : > { %v4974_v40 = vpop.eup %4973 }
 0x5cc   : > { %v1991_v41 = vsel %vm1298_vm4, %v4974_v40, 0.0 }
 0x5cd   : > { %1992 = vadd.xlane.f32.xlu0 %v1991_v41 }
 0x5d3   : > { %v4976_v4 = vpop.eup %4975 }
 0x5d4   : > { %v1997_v6 = vsel %vm1298_vm4, %v4976_v4, 0.0 }
 0x5e3   : > { %4834 = vrot.lane.b32.xlu0 %v5343_v50, %s5053_s30 }
 0x5f5   : > { %v1972_v52 = vpop.xlane.xlu1 %1971 }
 0x5f6   : > { %v1980_v42 = vsub.f32 %v1800_v61, %v1972_v52 }
 0x5f8   : > { %v1985_v53 = vmul.f32 1.442695, %v1980_v42 }
 0x5f9   : > { %v4840_v54 = vpop.permute.xlu1 %4839 }
 0x5fa   : > { %4977 = vpow2.f32 %v1985_v53  ;;  %v4842_v37 = vunpack.i.h.bf16 %v4840_v54  ;;  %v4841_v59 = vunpack.i.l.bf16 %v4840_v54 }
 0x5fc   : > { %v4724_v31 = vpack.c.bf16 %v4842_v37, %v4841_v59 }
 0x5fd   : > { %v1978_v10 = vpop.xlane.xlu0 %1977  ;;  %v4845_v14 = vpop.permute.xlu1 %4844 }
 0x5fe   : > { %4725 = vmatpush3.bf16.msra.mxu1 %v4724_v31  ;;  %v1982_v2 = vsub.f32 %v1964_v18, %v1978_v10  ;;  %v4847_v22 = vunpack.i.h.bf16 %v4845_v14  ;;  %v4846_v38 = vunpack.i.l.bf16 %v4845_v14 }
 0x5ff   : > { %4729 = vmatprep.subr.bf16.mxu1 %v5050_v20 }
 0x600   : > { %v1989_v34 = vmul.f32 1.442695, %v1982_v2  ;;  %v4727_v36 = vpack.c.bf16 %v4847_v22, %v4846_v38 }
 0x601   : > { %v4850_v41 = vpop.permute.xlu1 %4849 }
 0x602   : > { %1998 = vadd.xlane.f32.xlu0 %v1997_v6  ;;  %4979 = vpow2.f32 %v1989_v34  ;;  %v4852_v31 = vunpack.i.h.bf16 %v4850_v41  ;;  %v4851_v6 = vunpack.i.l.bf16 %v4850_v41 }
 0x604   : > { %v4978_v8 = vpop.eup %4977 }
 0x605   : > { %v1994_v9 = vsel %vm1298_vm4, %v4978_v8, 0.0 }
 0x606   : > { %1995 = vadd.xlane.f32.xlu1 %v1994_v9 }
 0x60c   : > { %v5572_v15 = vpop.eup %4979 }
 0x60d   : > { %v2000_v16 = vsel %vm1298_vm4, %v5572_v15, 0.0 }
 0x617   : > { %4859 = vrot.lane.b32.xlu1 %v5352_v62, %s5054_s10 }
 0x618   : > { %4854 = vrot.lane.b32.xlu0 %v5339_v48, %s5054_s10 }
 0x61b   : > { %4864 = vrot.lane.b32.xlu1 %v5365_v57, %s5054_s10 }
 0x61c   : > { %2339 = vrot.lane.b32.xlu0 %v5362_v56, %s5054_s10 }
 0x620   : > { %2421 = vrot.lane.b32.xlu0 %v5379_v3, %s5054_s10 }
 0x624   : > { %2503 = vrot.lane.b32.xlu0 %v5397_v27, %s5054_s10 }
 0x63f   : > { %2001 = vadd.xlane.f32.xlu1 %v2000_v16 }
 0x650   : > { %4869 = vrot.lane.b32.xlu1 %v5382_v21, %s5054_s10 }
 0x654   : > { %2585 = vrot.lane.b32.xlu1 %v5404_v32, %s5054_s10 }
 0x65a   : > { %v1993_v12 = vpop.xlane.xlu0 %1992 }
 0x65b   : > { %4981 = vrcp.f32 %v1993_v12 }
 0x65e   : > { %v4835_v19 = vpop.permute.xlu0 %4834 }
 0x65f   : > { %v4837_v61 = vunpack.i.h.bf16 %v4835_v19  ;;  %v4836_v55 = vunpack.i.l.bf16 %v4835_v19 }
 0x661   : > { %v4721_v46 = vpack.c.bf16 %v4837_v61, %v4836_v55 }
 0x663   : > { %4722 = vmatpush3.bf16.msra.mxu0 %v4721_v46 }
 0x664   : > { %4726 = vmatprep.subr.bf16.mxu0 %v5050_v20 }
 0x665   : > { %v4982_v18 = vpop.eup %4981 }
 0x666   : > { %v2007_v26 = vmul.f32 %v4982_v18, %v4974_v40 }
 0x668   : > { %v2011_v33 = vmul.f32 %v2007_v26, %v5470_v1 }
 0x66a   : > { %4503 = vmatmul.mubr.msk.f32.vlgmr.msra.gmra.mrb[18].mxu0 %vm1298_vm4, %v2011_v33 }
 0x66b   : > { %4728 = vmatpush3.bf16.msra.mxu0 %v4727_v36  ;;  %4516 = vmatprep.mubr.msk.f32.mxu0 %vm5051_vm1, %v5052_v13 }
 0x66c   : > { %4732 = vmatprep.subr.bf16.mxu0 %v5050_v20 }
 0x68f   : > { %v1999_v43 = vpop.xlane.xlu0 %1998 }
 0x690   : > { %4983 = vrcp.f32 %v1999_v43 }
 0x693   : > { %v1996_v45 = vpop.xlane.xlu1 %1995  ;;  %v4855_v44 = vpop.permute.xlu0 %4854 }
 0x694   : > { %4985 = vrcp.f32 %v1996_v45  ;;  %v4857_v40 = vunpack.i.h.bf16 %v4855_v44  ;;  %v4856_v53 = vunpack.i.l.bf16 %v4855_v44 }
 0x696   : > { %v4733_v9 = vpack.c.bf16 %v4857_v40, %v4856_v53 }
 0x697   : > { %v4860_v52 = vpop.permute.xlu1 %4859  ;;  %v2340_v16 = vpop.permute.xlu0 %2339 }
 0x698   : > { %v4862_v18 = vunpack.i.h.bf16 %v4860_v52  ;;  %v4861_v22 = vunpack.i.l.bf16 %v4860_v52 }
 0x69a   : > { %v4984_v42 = vpop.eup %4983  ;;  %v4737_v33 = vpack.c.bf16 %v4862_v18, %v4861_v22 }
 0x69b   : > { %v2009_v54 = vmul.f32 %v4984_v42, %v4976_v4  ;;  %v4865_v2 = vpop.permute.xlu1 %4864  ;;  %v4730_v4 = vpack.c.bf16 %v4852_v31, %v4851_v6  ;;  %v2422_v61 = vpop.permute.xlu0 %2421 }
 0x69c   : > { %v4867_v12 = vunpack.i.h.bf16 %v4865_v2  ;;  %v4866_v19 = vunpack.i.l.bf16 %v4865_v2 }
 0x69d   : > { %v2013_v37 = vmul.f32 %v2009_v54, %v5485_v25 }
 0x69e   : > { %v4986_v59 = vpop.eup %4985 }
 0x69f   : > { %v2008_v10 = vmul.f32 %v4986_v59, %v4978_v8  ;;  %4517 = vmatmul.mubr.msk.f32.vlgmr.msra.gmra.mrb[20].mxu0 %vm1298_vm4, %v2013_v37  ;;  %v4741_v8 = vpack.c.bf16 %v4867_v12, %v4866_v19  ;;  %v2504_v55 = vpop.permute.xlu0 %2503 }
 0x6a0   : > { %4735 = vmatpush3.bf16.xpose.msk.msra.mxu0 %vm5333_vm3, %v4733_v9  ;;  %4530 = vmatprep.mubr.msk.f32.mxu0 %vm5051_vm1, %v5052_v13 }
 0x6a1   : > { %v2012_v34 = vmul.f32 %v2008_v10, %v5474_v7  ;;  %4740 = vmatprep.subr.bf16.mxu0 %v5050_v20 }
 0x6a3   : > { %4510 = vmatmul.mubr.msk.f32.vlgmr.msra.gmra.mrb[26].mxu1 %vm1298_vm4, %v2012_v34 }
 0x6a4   : > { %4731 = vmatpush3.bf16.msra.mxu1 %v4730_v4  ;;  %4523 = vmatprep.mubr.msk.f32.mxu1 %vm5051_vm1, %v5052_v13 }
 0x6a5   : > { %4736 = vmatprep.subr.bf16.mxu1 %v5050_v20 }
 0x6a7   : > { %4531 = vmatmul.mubr.msk.f32.vlgmr.msra.gmra.mrb[22].mxu0 %vm981_vm2, %v2340_v16 }
 0x6a8   : > { %4743 = vmatpush3.bf16.xpose.msk.msra.mxu0 %vm5333_vm3, %v4741_v8  ;;  %4544 = vmatprep.mubr.msk.f32.mxu0 %vm5051_vm1, %v5052_v13 }
 0x6a9   : > { %4748 = vmatprep.subr.bf16.mxu0 %v5050_v20 }
 0x6af   : > { %4545 = vmatmul.mubr.msk.f32.vlgmr.msra.gmra.mrb[24].mxu0 %vm981_vm2, %v2504_v55 }
 0x6b0   : > { %4558 = vmatprep.mubr.msk.f32.mxu0 %vm5051_vm1, %v5052_v13 }
 0x6cc   : > { %v2002_v46 = vpop.xlane.xlu1 %2001 }
 0x6cd   : > { %4987 = vrcp.f32 %v2002_v46 }
 0x6d0   : > { %v4870_v36 = vpop.permute.xlu1 %4869 }
 0x6d1   : > { %v4872_v41 = vunpack.i.h.bf16 %v4870_v36  ;;  %v4871_v43 = vunpack.i.l.bf16 %v4870_v36 }
 0x6d3   : > { %v4745_v45 = vpack.c.bf16 %v4872_v41, %v4871_v43 }
 0x6d7   : > { %v4988_v14 = vpop.eup %4987 }
 0x6d8   : > { %v2010_v38 = vmul.f32 %v4988_v14, %v5572_v15  ;;  %v2586_v15 = vpop.permute.xlu1 %2585 }
 0x6da   : > { %v2014_v26 = vmul.f32 %v2010_v38, %v5514_v35 }
 0x6dc   : > { %4524 = vmatmul.mubr.msk.f32.vlgmr.msra.gmra.mrb[28].mxu1 %vm1298_vm4, %v2014_v26 }
 0x6dd   : > { %4739 = vmatpush3.bf16.xpose.msk.msra.mxu1 %vm5333_vm3, %v4737_v33  ;;  %4537 = vmatprep.mubr.msk.f32.mxu1 %vm5051_vm1, %v5052_v13 }
 0x6de   : > { %4744 = vmatprep.subr.bf16.mxu1 %v5050_v20 }
 0x6e4   : > { %4538 = vmatmul.mubr.msk.f32.vlgmr.msra.gmra.mrb[30].mxu1 %vm981_vm2, %v2422_v61 }
 0x6e5   : > { %4747 = vmatpush3.bf16.xpose.msk.msra.mxu1 %vm5333_vm3, %v4745_v45  ;;  %4551 = vmatprep.mubr.msk.f32.mxu1 %vm5051_vm1, %v5052_v13 }
 0x6e6   : > { %4751 = vmatprep.subr.bf16.mxu1 %v5050_v20 }
 0x6ec   : > { %4552 = vmatmul.mubr.msk.f32.vlgmr.msra.gmra.mrb[32].mxu1 %vm981_vm2, %v2586_v15 }
 0x6ed   : > { %4565 = vmatprep.mubr.msk.f32.mxu1 %vm5051_vm1, %v5052_v13 }
 0x73d   : > { %v5624_v44 = vpop.f32.mrb[18].mxu0 }
 0x73e   : > { %v4504_v52 = vpop.f32.mrb[19].mxu0 }
 0x772   : > { %v5626_v42 = vpop.f32.mrb[20].mxu0 }
 0x773   : > { %v4518_v40 = vpop.f32.mrb[21].mxu0 }
 0x776   : > { %v5628_v53 = vpop.f32.mrb[26].mxu1 }
 0x777   : > { %v4511_v54 = vpop.f32.mrb[27].mxu1 }
 0x77a   : > { %v2417_v37 = vpop.f32.mrb[22].mxu0 }
 0x77b   : > { %v2418_v59 = vadd.f32 %v2417_v37, %v5425_v39  ;;  %v4532_v31 = vpop.f32.mrb[23].mxu0 }
 0x77d   : > { %v2667_v6 = vsel %vm1298_vm4, %v2418_v59, -inf }
 0x77e   : > { %2668 = vmax.xlane.f32.xlu0 %v2667_v6 }
 0x782   : > { %v2581_v9 = vpop.f32.mrb[24].mxu0 }
 0x783   : > { %v2582_v10 = vadd.f32 %v2581_v9, %v5438_v60  ;;  %v4546_v2 = vpop.f32.mrb[25].mxu0 }
 0x785   : > { %v2673_v34 = vsel %vm1298_vm4, %v2582_v10, -inf }
 0x786   : > { %2674 = vmax.xlane.f32.xlu0 %v2673_v34 }
 0x7af   : > { %v5634_v4 = vpop.f32.mrb[28].mxu1 }
 0x7b0   : > { %v4525_v16 = vpop.f32.mrb[29].mxu1 }
 0x7b7   : > { %v2499_v12 = vpop.f32.mrb[30].mxu1 }
 0x7b8   : > { %v2500_v19 = vadd.f32 %v2499_v12, %v5432_v51  ;;  %v4539_v8 = vpop.f32.mrb[31].mxu1 }
 0x7ba   : > { %v2670_v61 = vsel %vm1298_vm4, %v2500_v19, -inf }
 0x7bb   : > { %2671 = vmax.xlane.f32.xlu1 %v2670_v61 }
 0x7bf   : > { %v2663_v55 = vpop.f32.mrb[32].mxu1 }
 0x7c0   : > { %v2664_v46 = vadd.f32 %v2663_v55, %v5443_v5  ;;  %v4553_v14 = vpop.f32.mrb[33].mxu1 }
 0x7c2   : > { %v2676_v18 = vsel %vm1298_vm4, %v2664_v46, -inf }
 0x7c3   : > { %2677 = vmax.xlane.f32.xlu0 %v2676_v18 }
 0x7cc   : > { %4879 = vrot.lane.b32.xlu1 %v5358_v63, %s5054_s10 }
 0x7d0   : > { %4884 = vrot.lane.b32.xlu1 %v5367_v11, %s5054_s10 }
 0x7d4   : > { %4889 = vrot.lane.b32.xlu1 %v5388_v28, %s5054_s10 }
 0x80b   : > { %v2669_v22 = vpop.xlane.xlu0 %2668 }
 0x80c   : > { %v2679_v38 = vsub.f32 %v2418_v59, %v2669_v22 }
 0x80e   : > { %v2683_v26 = vmul.f32 1.442695, %v2679_v38 }
 0x810   : > { %4989 = vpow2.f32 %v2683_v26 }
 0x813   : > { %v2675_v41 = vpop.xlane.xlu0 %2674 }
 0x814   : > { %v2681_v43 = vsub.f32 %v2582_v10, %v2675_v41 }
 0x816   : > { %v2687_v45 = vmul.f32 1.442695, %v2681_v43 }
 0x818   : > { %4991 = vpow2.f32 %v2687_v45 }
 0x81a   : > { %v4990_v33 = vpop.eup %4989 }
 0x81b   : > { %v2691_v36 = vsel %vm1298_vm4, %v4990_v33, 0.0 }
 0x81c   : > { %2692 = vadd.xlane.f32.xlu0 %v2691_v36 }
 0x822   : > { %v4992_v37 = vpop.eup %4991 }
 0x823   : > { %v2697_v9 = vsel %vm1298_vm4, %v4992_v37, 0.0 }
 0x832   : > { %4874 = vrot.lane.b32.xlu0 %v5343_v50, %s5054_s10  ;;  %s348_s10 = scalar_lea.vmem %s5871_s8, %s4124_s9 }
 0x848   : > { %v2672_v15 = vpop.xlane.xlu1 %2671 }
 0x849   : > { %v2680_v52 = vsub.f32 %v2500_v19, %v2672_v15 }
 0x84b   : > { %v2685_v40 = vmul.f32 1.442695, %v2680_v52 }
 0x84c   : > { %v4880_v54 = vpop.permute.xlu1 %4879 }
 0x84d   : > { %4993 = vpow2.f32 %v2685_v40  ;;  %v4882_v59 = vunpack.i.h.bf16 %v4880_v54  ;;  %v4881_v31 = vunpack.i.l.bf16 %v4880_v54 }
 0x84f   : > { %v4752_v6 = vpack.c.bf16 %v4882_v59, %v4881_v31 }
 0x850   : > { %v2678_v34 = vpop.xlane.xlu0 %2677  ;;  %v4885_v61 = vpop.permute.xlu1 %4884 }
 0x851   : > { %4753 = vmatpush3.bf16.msra.mxu1 %v4752_v6  ;;  %2698 = vadd.xlane.f32.xlu0 %v2697_v9  ;;  %v2682_v16 = vsub.f32 %v2664_v46, %v2678_v34  ;;  %v4887_v46 = vunpack.i.h.bf16 %v4885_v61  ;;  %v4886_v14 = vunpack.i.l.bf16 %v4885_v61 }
 0x852   : > { %4757 = vmatprep.subr.bf16.mxu1 %v5050_v20 }
 0x853   : > { %v2689_v12 = vmul.f32 1.442695, %v2682_v16 }
 0x854   : > { %v4890_v22 = vpop.permute.xlu1 %4889 }
 0x855   : > { %4995 = vpow2.f32 %v2689_v12  ;;  %v4892_v54 = vunpack.i.h.bf16 %v4890_v22  ;;  %v4891_v59 = vunpack.i.l.bf16 %v4890_v22 }
 0x857   : > { %v4994_v2 = vpop.eup %4993 }
 0x858   : > { %v2694_v10 = vsel %vm1298_vm4, %v4994_v2, 0.0 }
 0x859   : > { %2695 = vadd.xlane.f32.xlu1 %v2694_v10  ;;  %v4758_v10 = vpack.c.bf16 %v4892_v54, %v4891_v59 }
 0x85f   : > { %v5662_v19 = vpop.eup %4995 }
 0x867   : > { %4894 = vrot.lane.b32.xlu0 %v5339_v48, %s5055_s11  ;;  %v2700_v48 = vsel %vm1298_vm4, %v5662_v19, 0.0 }
 0x86a   : > { %4899 = vrot.lane.b32.xlu1 %v5352_v62, %s5055_s11 }
 0x86b   : > { %4904 = vrot.lane.b32.xlu0 %v5365_v57, %s5055_s11 }
 0x86f   : > { %3031 = vrot.lane.b32.xlu0 %v5362_v56, %s5055_s11 }
 0x873   : > { %3195 = vrot.lane.b32.xlu0 %v5397_v27, %s5055_s11 }
 0x88e   : > { %2701 = vadd.xlane.f32.xlu1 %v2700_v48 }
 0x89f   : > { %4909 = vrot.lane.b32.xlu1 %v5382_v21, %s5055_s11 }
 0x8a3   : > { %3113 = vrot.lane.b32.xlu1 %v5379_v3, %s5055_s11  ;;  %v4755_v3 = vpack.c.bf16 %v4887_v46, %v4886_v14 }
 0x8a7   : > { %3277 = vrot.lane.b32.xlu1 %v5404_v32, %s5055_s11 }
 0x8a9   : > { %v2693_v62 = vpop.xlane.xlu0 %2692 }
 0x8aa   : > { %4997 = vrcp.f32 %v2693_v62 }
 0x8ad   : > { %v4875_v56 = vpop.permute.xlu0 %4874 }
 0x8ae   : > { %v4877_v57 = vunpack.i.h.bf16 %v4875_v56  ;;  %v4876_v27 = vunpack.i.l.bf16 %v4875_v56 }
 0x8b0   : > { %v4749_v8 = vpack.c.bf16 %v4877_v57, %v4876_v27 }
 0x8b2   : > { %4750 = vmatpush3.bf16.msra.mxu0 %v4749_v8 }
 0x8b3   : > { %4754 = vmatprep.subr.bf16.mxu0 %v5050_v20 }
 0x8b4   : > { %v4998_v55 = vpop.eup %4997 }
 0x8b5   : > { %v2707_v21 = vmul.f32 %v4998_v55, %v4990_v33 }
 0x8b7   : > { %v2711_v18 = vmul.f32 %v2707_v21, %v5470_v1 }
 0x8b9   : > { %4559 = vmatmul.mubr.msk.f32.vlgmr.msra.gmra.mrb[26].mxu0 %vm1298_vm4, %v2711_v18 }
 0x8ba   : > { %4756 = vmatpush3.bf16.msra.mxu0 %v4755_v3  ;;  %4572 = vmatprep.mubr.msk.f32.mxu0 %vm5051_vm1, %v5052_v13 }
 0x8bb   : > { %4760 = vmatprep.subr.bf16.mxu0 %v5050_v20 }
 0x8de   : > { %v2699_v32 = vpop.xlane.xlu0 %2698 }
 0x8df   : > { %4999 = vrcp.f32 %v2699_v32 }
 0x8e2   : > { %v4895_v38 = vpop.permute.xlu0 %4894 }
 0x8e3   : > { %v4897_v41 = vunpack.i.h.bf16 %v4895_v38  ;;  %v4896_v33 = vunpack.i.l.bf16 %v4895_v38 }
 0x8e5   : > { %v4761_v15 = vpack.c.bf16 %v4897_v41, %v4896_v33 }
 0x8e6   : > { %v2696_v26 = vpop.xlane.xlu1 %2695  ;;  %v4905_v52 = vpop.permute.xlu0 %4904 }
 0x8e7   : > { %5001 = vrcp.f32 %v2696_v26  ;;  %v4907_v31 = vunpack.i.h.bf16 %v4905_v52  ;;  %v4906_v6 = vunpack.i.l.bf16 %v4905_v52 }
 0x8e9   : > { %v5000_v36 = vpop.eup %4999  ;;  %v4769_v34 = vpack.c.bf16 %v4907_v31, %v4906_v6 }
 0x8ea   : > { %v2709_v43 = vmul.f32 %v5000_v36, %v4992_v37  ;;  %v3032_v16 = vpop.permute.xlu0 %3031  ;;  %v4900_v12 = vpop.permute.xlu1 %4899 }
 0x8eb   : > { %v4902_v56 = vunpack.i.h.bf16 %v4900_v12  ;;  %v4901_v57 = vunpack.i.l.bf16 %v4900_v12 }
 0x8ec   : > { %v2713_v45 = vmul.f32 %v2709_v43, %v5485_v25 }
 0x8ed   : > { %v4765_v61 = vpack.c.bf16 %v4902_v56, %v4901_v57 }
 0x8ee   : > { %4573 = vmatmul.mubr.msk.f32.vlgmr.msra.gmra.mrb[28].mxu0 %vm1298_vm4, %v2713_v45 }
 0x8ef   : > { %4763 = vmatpush3.bf16.xpose.msk.msra.mxu0 %vm5333_vm3, %v4761_v15  ;;  %4586 = vmatprep.mubr.msk.f32.mxu0 %vm5051_vm1, %v5052_v13 }
 0x8f0   : > { %4768 = vmatprep.subr.bf16.mxu0 %v5050_v20 }
 0x8f1   : > { %v5002_v40 = vpop.eup %5001 }
 0x8f2   : > { %v2708_v37 = vmul.f32 %v5002_v40, %v4994_v2  ;;  %v3196_v2 = vpop.permute.xlu0 %3195 }
 0x8f4   : > { %v2712_v9 = vmul.f32 %v2708_v37, %v5474_v7 }
 0x8f6   : > { %4587 = vmatmul.mubr.msk.f32.vlgmr.msra.gmra.mrb[30].mxu0 %vm981_vm2, %v3032_v16  ;;  %4566 = vmatmul.mubr.msk.f32.vlgmr.msra.gmra.mrb[34].mxu1 %vm1298_vm4, %v2712_v9 }
 0x8f7   : > { %4759 = vmatpush3.bf16.msra.mxu1 %v4758_v10  ;;  %4771 = vmatpush3.bf16.xpose.msk.msra.mxu0 %vm5333_vm3, %v4769_v34 }
 0x8f8   : > { %4600 = vmatprep.mubr.msk.f32.mxu0 %vm5051_vm1, %v5052_v13  ;;  %4579 = vmatprep.mubr.msk.f32.mxu1 %vm5051_vm1, %v5052_v13 }
 0x8f9   : > { %4764 = vmatprep.subr.bf16.mxu1 %v5050_v20  ;;  %4776 = vmatprep.subr.bf16.mxu0 %v5050_v20 }
 0x8fe   : > { %4601 = vmatmul.mubr.msk.f32.vlgmr.msra.gmra.mrb[32].mxu0 %vm981_vm2, %v3196_v2 }
 0x8ff   : > { %4614 = vmatprep.mubr.msk.f32.mxu0 %vm5051_vm1, %v5052_v13 }
 0x91b   : > { %v2702_v48 = vpop.xlane.xlu1 %2701 }
 0x91c   : > { %5003 = vrcp.f32 %v2702_v48 }
 0x91f   : > { %v4910_v55 = vpop.permute.xlu1 %4909 }
 0x920   : > { %v4912_v46 = vunpack.i.h.bf16 %v4910_v55  ;;  %v4911_v14 = vunpack.i.l.bf16 %v4910_v55 }
 0x922   : > { %v4773_v21 = vpack.c.bf16 %v4912_v46, %v4911_v14 }
 0x923   : > { %v3114_v18 = vpop.permute.xlu1 %3113 }
 0x926   : > { %v5004_v62 = vpop.eup %5003 }
 0x927   : > { %v2710_v27 = vmul.f32 %v5004_v62, %v5662_v19  ;;  %v3278_v19 = vpop.permute.xlu1 %3277 }
 0x929   : > { %v2714_v8 = vmul.f32 %v2710_v27, %v5514_v35 }
 0x92b   : > { %4580 = vmatmul.mubr.msk.f32.vlgmr.msra.gmra.mrb[36].mxu1 %vm1298_vm4, %v2714_v8 }
 0x92c   : > { %4767 = vmatpush3.bf16.xpose.msk.msra.mxu1 %vm5333_vm3, %v4765_v61  ;;  %4593 = vmatprep.mubr.msk.f32.mxu1 %vm5051_vm1, %v5052_v13 }
 0x92d   : > { %4772 = vmatprep.subr.bf16.mxu1 %v5050_v20 }
 0x933   : > { %4594 = vmatmul.mubr.msk.f32.vlgmr.msra.gmra.mrb[38].mxu1 %vm981_vm2, %v3114_v18 }
 0x934   : > { %4775 = vmatpush3.bf16.xpose.msk.msra.mxu1 %vm5333_vm3, %v4773_v21  ;;  %4607 = vmatprep.mubr.msk.f32.mxu1 %vm5051_vm1, %v5052_v13 }
 0x935   : > { %4779 = vmatprep.subr.bf16.mxu1 %v5050_v20 }
 0x93b   : > { %4608 = vmatmul.mubr.msk.f32.vlgmr.msra.gmra.mrb[40].mxu1 %vm981_vm2, %v3278_v19 }
 0x93c   : > { %4621 = vmatprep.mubr.msk.f32.mxu1 %vm5051_vm1, %v5052_v13 }
 0x98c   : > { %v2790_v3 = vpop.f32.mrb[26].mxu0 }
 0x98d   : > { %v4560_v32 = vpop.f32.mrb[27].mxu0 }
 0x9c1   : > { %v2948_v22 = vpop.f32.mrb[28].mxu0 }
 0x9c2   : > { %v4574_v38 = vpop.f32.mrb[29].mxu0 }
 0x9c9   : > { %v3109_v26 = vpop.f32.mrb[30].mxu0  ;;  %v5716_v36 = vpop.f32.mrb[34].mxu1 }
 0x9ca   : > { %v3110_v29 = vadd.f32 %v3109_v26, %v5425_v39  ;;  %v4588_v41 = vpop.f32.mrb[31].mxu0  ;;  %v4567_v33 = vpop.f32.mrb[35].mxu1 }
 0x9cc   : > { %v3359_v43 = vsel %vm1298_vm4, %v3110_v29, -inf }
 0x9cd   : > { %3360 = vmax.xlane.f32.xlu0 %v3359_v43 }
 0x9d1   : > { %v3273_v45 = vpop.f32.mrb[32].mxu0 }
 0x9d2   : > { %v3274_v15 = vadd.f32 %v3273_v45, %v5438_v60  ;;  %v4602_v52 = vpop.f32.mrb[33].mxu0 }
 0x9d4   : > { %v3365_v40 = vsel %vm1298_vm4, %v3274_v15, -inf }
 0x9d5   : > { %3366 = vmax.xlane.f32.xlu0 %v3365_v40 }
 0x9fe   : > { %v3027_v54 = vpop.f32.mrb[36].mxu1 }
 0x9ff   : > { %v4581_v59 = vpop.f32.mrb[37].mxu1 }
 0xa06   : > { %v3191_v31 = vpop.f32.mrb[38].mxu1 }
 0xa07   : > { %v3192_v6 = vadd.f32 %v3191_v31, %v5432_v51  ;;  %v4595_v37 = vpop.f32.mrb[39].mxu1 }
 0xa09   : > { %v3362_v39 = vsel %vm1298_vm4, %v3192_v6, -inf }
 0xa0a   : > { %3363 = vmax.xlane.f32.xlu1 %v3362_v39 }
 0xa0e   : > { %v3355_v9 = vpop.f32.mrb[40].mxu1 }
 0xa0f   : > { %v3356_v10 = vadd.f32 %v3355_v9, %v5443_v5  ;;  %v4609_v34 = vpop.f32.mrb[41].mxu1 }
 0xa11   : > { %v3368_v16 = vsel %vm1298_vm4, %v3356_v10, -inf }
 0xa12   : > { %3369 = vmax.xlane.f32.xlu0 %v3368_v16 }
 0xa5a   : > { %v3361_v60 = vpop.xlane.xlu0 %3360 }
 0xa5b   : > { %v3371_v2 = vsub.f32 %v3110_v29, %v3361_v60 }
 0xa5d   : > { %v3375_v12 = vmul.f32 1.442695, %v3371_v2 }
 0xa5f   : > { %5005 = vpow2.f32 %v3375_v12 }
 0xa62   : > { %v3367_v48 = vpop.xlane.xlu0 %3366 }
 0xa63   : > { %v3373_v62 = vsub.f32 %v3274_v15, %v3367_v48 }
 0xa65   : > { %v3379_v56 = vmul.f32 1.442695, %v3373_v62 }
 0xa67   : > { %5007 = vpow2.f32 %v3379_v56 }
 0xa69   : > { %v5006_v51 = vpop.eup %5005 }
 0xa6a   : > { %v3383_v57 = vsel %vm1298_vm4, %v5006_v51, 0.0 }
 0xa6b   : > { %3384 = vadd.xlane.f32.xlu0 %v3383_v57 }
 0xa71   : > { %v5008_v27 = vpop.eup %5007 }
 0xa72   : > { %v3389_v8 = vsel %vm1298_vm4, %v5008_v27, 0.0 }
 0xa73   : > { %3390 = vadd.xlane.f32.xlu0 %v3389_v8 }
 0xa89   : > { %4914 = vrot.lane.b32.xlu0 %v5343_v50, %s5055_s11 }
 0xa8d   : > { %3727 = vrot.lane.b32.xlu0 %v5624_v44, %s5056_s13 }
 0xa91   : > { %3743 = vrot.lane.b32.xlu0 %v2790_v3, %s5057_s14 }
 0xa95   : > { %3731 = vrot.lane.b32.xlu0 %v5626_v42, %s5056_s13 }
 0xa97   : > { %v3364_v5 = vpop.xlane.xlu1 %3363 }
 0xa98   : > { %v3372_v61 = vsub.f32 %v3192_v6, %v3364_v5 }
 0xa99   : > { %3747 = vrot.lane.b32.xlu0 %v2948_v22, %s5057_s14 }
 0xa9a   : > { %v3377_v55 = vmul.f32 1.442695, %v3372_v61 }
 0xa9c   : > { %5009 = vpow2.f32 %v3377_v55  ;;  %v5037_v55 = vld [vmem:[%s5120_s12] sm:$0xff] }
 0xa9f   : > { %v3370_v50 = vpop.xlane.xlu0 %3369 }
 0xaa0   : > { %v3374_v44 = vsub.f32 %v3356_v10, %v3370_v50 }
 0xaa2   : > { %v3381_v21 = vmul.f32 1.442695, %v3374_v44 }
 0xaa4   : > { %5011 = vpow2.f32 %v3381_v21 }
 0xaa6   : > { %v5010_v46 = vpop.eup %5009 }
 0xaa7   : > { %v3386_v14 = vsel %vm1298_vm4, %v5010_v46, 0.0 }
 0xaa8   : > { %3387 = vadd.xlane.f32.xlu1 %v3386_v14 }
 0xaae   : > { %v5012_v42 = vpop.eup %5011 }
 0xaaf   : > { %v3392_v18 = vsel %vm1298_vm4, %v5012_v42, 0.0 }
 0xab9   : > { %4919 = vrot.lane.b32.xlu1 %v5358_v63, %s5055_s11 }
 0xabd   : > { %4924 = vrot.lane.b32.xlu1 %v5367_v11, %s5055_s11 }
 0xae1   : > { %3393 = vadd.xlane.f32.xlu1 %v3392_v18 }
 0xaf2   : > { %4929 = vrot.lane.b32.xlu1 %v5388_v28, %s5055_s11 }
 0xaf6   : > { %3729 = vrot.lane.b32.xlu1 %v5628_v53, %s5056_s13 }
 0xaf8   : > { %v3385_v19 = vpop.xlane.xlu0 %3384 }
 0xaf9   : > { %5013 = vrcp.f32 %v3385_v19 }
 0xafa   : > { %3745 = vrot.lane.b32.xlu1 %v5716_v36, %s5057_s14 }
 0xafe   : > { %3733 = vrot.lane.b32.xlu1 %v5634_v4, %s5056_s13 }
 0xb00   : > { %v3391_v63 = vpop.xlane.xlu0 %3390 }
 0xb01   : > { %5015 = vrcp.f32 %v3391_v63 }
 0xb02   : > { %3749 = vrot.lane.b32.xlu1 %v3027_v54, %s5057_s14 }
 0xb03   : > { %v5014_v11 = vpop.eup %5013 }
 0xb04   : > { %v4915_v3 = vpop.permute.xlu0 %4914  ;;  %v3399_v38 = vmul.f32 %v5014_v11, %v5006_v51 }
 0xb05   : > { %v4917_v32 = vunpack.i.h.bf16 %v4915_v3  ;;  %v4916_v22 = vunpack.i.l.bf16 %v4915_v3 }
 0xb06   : > { %v3403_v29 = vmul.f32 %v3399_v38, %v5470_v1  ;;  %v5038_v38 = vld [vmem:[%s5120_s12 + $0x8] sm:$0xff] }
 0xb07   : > { %v4777_v26 = vpack.c.bf16 %v4917_v32, %v4916_v22 }
 0xb08   : > { %v3728_v48 = vpop.permute.xlu0 %3727 }
 0xb09   : > { %4778 = vmatpush3.bf16.msra.mxu0 %v4777_v26 }
 0xb0a   : > { %4782 = vmatprep.subr.bf16.mxu0 %v5050_v20 }
 0xb0b   : > { %v5016_v41 = vpop.eup %5015 }
 0xb0c   : > { %4615 = vmatmul.mubr.msk.f32.vlgmr.msra.gmra.mrb[34].mxu0 %vm1298_vm4, %v3403_v29  ;;  %v3401_v1 = vmul.f32 %v5016_v41, %v5008_v27  ;;  %v3744_v62 = vpop.permute.xlu0 %3743  ;;  %v5039_v29 = vld [vmem:[%s5120_s12 + $0x10] sm:$0xff] }
 0xb0d   : > { %4628 = vmatprep.mubr.msk.f32.mxu0 %vm5051_vm1, %v5052_v13 }
 0xb0e   : > { %v3405_v31 = vmul.f32 %v3401_v1, %v5485_v25 }
 0xb10   : > { %v3732_v56 = vpop.permute.xlu0 %3731 }
 0xb14   : > { %v3748_v51 = vpop.permute.xlu0 %3747 }
 0xb35   : > { %v3388_v28 = vpop.xlane.xlu1 %3387 }
 0xb36   : > { %5017 = vrcp.f32 %v3388_v28 }
 0xb39   : > { %v4920_v53 = vpop.permute.xlu1 %4919 }
 0xb3a   : > { %v4922_v4 = vunpack.i.h.bf16 %v4920_v53  ;;  %v4921_v36 = vunpack.i.l.bf16 %v4920_v53 }
 0xb3c   : > { %v4780_v33 = vpack.c.bf16 %v4922_v4, %v4921_v36 }
 0xb3d   : > { %v4925_v43 = vpop.permute.xlu1 %4924 }
 0xb3e   : > { %v4927_v45 = vunpack.i.h.bf16 %v4925_v43  ;;  %v4926_v15 = vunpack.i.l.bf16 %v4925_v43  ;;  %4781 = vmatpush3.bf16.msra.mxu1 %v4780_v33  ;;  %v5040_v33 = vld [vmem:[%s5120_s12 + $0x18] sm:$0xff] }
 0xb3f   : > { %4785 = vmatprep.subr.bf16.mxu1 %v5050_v20 }
 0xb40   : > { %v5018_v52 = vpop.eup %5017  ;;  %v4783_v40 = vpack.c.bf16 %v4927_v45, %v4926_v15 }
 0xb41   : > { %v3400_v54 = vmul.f32 %v5018_v52, %v5010_v46 }
 0xb42   : > { %4784 = vmatpush3.bf16.msra.mxu0 %v4783_v40 }
 0xb43   : > { %v3404_v59 = vmul.f32 %v3400_v54, %v5474_v7 }
 0xb45   : > { %4622 = vmatmul.mubr.msk.f32.vlgmr.msra.gmra.mrb[42].mxu1 %vm1298_vm4, %v3404_v59  ;;  %4629 = vmatmul.mubr.msk.f32.vlgmr.msra.gmra.mrb[36].mxu0 %vm1298_vm4, %v3405_v31 }
 0xb46   : > { %4635 = vmatprep.mubr.msk.f32.mxu1 %vm5051_vm1, %v5052_v13 }
 0xb6e   : > { %v3394_v6 = vpop.xlane.xlu1 %3393 }
 0xb6f   : > { %5019 = vrcp.f32 %v3394_v6 }
 0xb72   : > { %v4930_v37 = vpop.permute.xlu1 %4929 }
 0xb73   : > { %v4932_v39 = vunpack.i.h.bf16 %v4930_v37  ;;  %v4931_v20 = vunpack.i.l.bf16 %v4930_v37 }
 0xb75   : > { %v4786_v9 = vpack.c.bf16 %v4932_v39, %v4931_v20 }
 0xb76   : > { %v3730_v50 = vpop.permute.xlu1 %3729 }
 0xb77   : > { %4787 = vmatpush3.bf16.msra.mxu1 %v4786_v9  ;;  %v3772_v18 = vsel %vm981_vm2, %v5534_v0, %v3730_v50 }
 0xb79   : > { %v5020_v10 = vpop.eup %5019 }
 0xb7a   : > { %v3402_v34 = vmul.f32 %v5020_v10, %v5012_v42  ;;  %v3746_v44 = vpop.permute.xlu1 %3745  ;;  %v3773_v42 = vsel %vm981_vm2, %v5536_v47, %v3732_v56 }
 0xb7b   : > { %v3777_v19 = vsel %vm1298_vm4, %v3773_v42, %v3748_v51  ;;  %v3776_v63 = vsel %vm1298_vm4, %v3772_v18, %v3746_v44 }
 0xb7c   : > { %v3406_v7 = vmul.f32 %v3402_v34, %v5514_v35  ;;  %v3771_v35 = vsel %vm981_vm2, %v5532_v58, %v3728_v48 }
 0xb7d   : > { %v3775_v27 = vsel %vm1298_vm4, %v3771_v35, %v3744_v62 }
 0xb7e   : > { %4636 = vmatmul.mubr.msk.f32.vlgmr.msra.gmra.mrb[44].mxu1 %vm1298_vm4, %v3406_v7  ;;  %v3734_v58 = vpop.permute.xlu1 %3733  ;;  %v3856_v7 = vld [vmem:[%s5869_s6] sm:$0xff] }
 0xb7f   : > { %v3774_v53 = vsel %vm981_vm2, %v5542_v17, %v3734_v58 }
 0xb82   : > { %v3750_v21 = vpop.permute.xlu1 %3749 }
 0xb83   : > { %v3778_v4 = vsel %vm1298_vm4, %v3774_v53, %v3750_v21 }
 0xbdf   : > { %v3482_v25 = vpop.f32.mrb[34].mxu0 }
 0xbe0   : > { %3759 = vrot.lane.b32.xlu0 %v3482_v25, %s5058_s15  ;;  %v4616_v16 = vpop.f32.mrb[35].mxu0  ;;  %v3857_v25 = vld [vmem:[%s5869_s6 + $0x8] sm:$0xff] }
 0xbe1   : > { %v4788_v16 = vpack.c.bf16 %v3857_v25, %v3856_v7 }
 0xbe3   : > { %4789 = vmatprep.subr.bf16.mxu0 %v4788_v16 }
 0xbe4   : > { %4791 = vmatpush3.bf16.msra.mxu0 %v4788_v16 }
 0xc18   : > { %v3561_v60 = vpop.f32.mrb[42].mxu1  ;;  %v3640_v2 = vpop.f32.mrb[36].mxu0 }
 0xc19   : > { %v4623_v13 = vpop.f32.mrb[43].mxu1  ;;  %3761 = vrot.lane.b32.xlu1 %v3561_v60, %s5058_s15  ;;  %3763 = vrot.lane.b32.xlu0 %v3640_v2, %s5058_s15  ;;  %v4630_v12 = vpop.f32.mrb[37].mxu0  ;;  %v3858_v60 = vld [vmem:[%s5869_s6 + $0x10] sm:$0xff]  ;;  %v3859_v2 = vld [vmem:[%s5869_s6 + $0x18] sm:$0xff] }
 0xc1a   : > { %v4792_v13 = vpack.c.bf16 %v3859_v2, %v3858_v60 }
 0xc1c   : > { %4793 = vmatprep.subr.bf16.mxu0 %v4792_v13 }
 0xc1d   : > { %4795 = vmatpush3.bf16.msra.mxu0 %v4792_v13 }
 0xc51   : > { %v3719_v57 = vpop.f32.mrb[44].mxu1 }
 0xc52   : > { %3765 = vrot.lane.b32.xlu1 %v3719_v57, %s5058_s15  ;;  %v4637_v8 = vpop.f32.mrb[45].mxu1  ;;  %v3760_v5 = vpop.permute.xlu0 %3759 }
 0xc53   : > { %v3780_v61 = vsel %vm3779_vm5, %v3775_v27, %v3760_v5  ;;  %v5816_v8 = vld [vmem:[%s5870_s7 + $0x8] sm:$0xf] }
 0xc54   : > { %v5762_v46 = vadd.f32 %v5037_v55, %v3780_v61  ;;  %v3843_v5 = vrot.slane %v5816_v8, %v5323_v30 }
 0xc56   : > { %v3788_v14 = vsel %vm368_vm0, %v5762_v46, 0.0 }
 0xc57   : > { %3789 = vadd.xlane.f32.xlu0 %v3788_v14  ;;  %v3851_v14 = vrot.slane %v5816_v8, %v681_v23 }
 0xc8b   : > { %v3762_v11 = vpop.permute.xlu1 %3761  ;;  %v3764_v3 = vpop.permute.xlu0 %3763 }
 0xc8c   : > { %v3781_v32 = vsel %vm3779_vm5, %v3776_v63, %v3762_v11  ;;  %v3782_v22 = vsel %vm3779_vm5, %v3777_v19, %v3764_v3 }
 0xc8d   : > { %v5775_v26 = vadd.f32 %v5038_v38, %v3781_v32  ;;  %v5778_v28 = vadd.f32 %v5039_v29, %v3782_v22 }
 0xc8f   : > { %v3791_v0 = vsel %vm368_vm0, %v5775_v26, 0.0  ;;  %v3794_v47 = vsel %vm368_vm0, %v5778_v28, 0.0 }
 0xc90   : > { %3792 = vadd.xlane.f32.xlu1 %v3791_v0  ;;  %3795 = vadd.xlane.f32.xlu0 %v3794_v47 }
 0xcc4   : > { %v3766_v36 = vpop.permute.xlu1 %3765 }
 0xcc5   : > { %v3783_v41 = vsel %vm3779_vm5, %v3778_v4, %v3766_v36 }
 0xcc6   : > { %v5789_v43 = vadd.f32 %v5040_v33, %v3783_v41 }
 0xcc8   : > { %v3797_v45 = vsel %vm368_vm0, %v5789_v43, 0.0 }
 0xcc9   : > { %3798 = vadd.xlane.f32.xlu0 %v3797_v45  ;;  %v3862_v45 = vsub.s32 3, %v5242_v49 }
 0xce4   : > { %v3790_v15 = vpop.xlane.xlu0 %3789 }
 0xce5   : > { %v3800_v1 = vmul.f32 0.03125, %v3790_v15  ;;  %v5041_v15 = vld [vmem:[%s5870_s7] sm:$0xff] }
 0xce7   : > { %v3804_v52 = vsub.f32 %v5762_v46, %v3800_v1  ;;  %v3863_v1 = vrot.slane %v5041_v15, %v3862_v45 }
 0xce9   : > { %v3808_v40 = vmul.f32 %v3804_v52, %v3804_v52 }
 0xceb   : > { %v3812_v54 = vsel %vm368_vm0, %v3808_v40, 0.0 }
 0xcec   : > { %3813 = vadd.xlane.f32.xlu0 %v3812_v54 }
 0xd1d   : > { %v3793_v17 = vpop.xlane.xlu1 %3792  ;;  %v3796_v59 = vpop.xlane.xlu0 %3795 }
 0xd1e   : > { %v3801_v31 = vmul.f32 0.03125, %v3793_v17  ;;  %v3802_v6 = vmul.f32 0.03125, %v3796_v59 }
 0xd20   : > { %v3805_v37 = vsub.f32 %v5775_v26, %v3801_v31  ;;  %v3806_v39 = vsub.f32 %v5778_v28, %v3802_v6 }
 0xd22   : > { %v3809_v20 = vmul.f32 %v3805_v37, %v3805_v37  ;;  %v3810_v9 = vmul.f32 %v3806_v39, %v3806_v39 }
 0xd24   : > { %v3815_v10 = vsel %vm368_vm0, %v3809_v20, 0.0  ;;  %v3818_v34 = vsel %vm368_vm0, %v3810_v9, 0.0 }
 0xd25   : > { %3816 = vadd.xlane.f32.xlu1 %v3815_v10  ;;  %3819 = vadd.xlane.f32.xlu0 %v3818_v34 }
 0xd56   : > { %v3799_v12 = vpop.xlane.xlu0 %3798 }
 0xd57   : > { %v3803_v48 = vmul.f32 0.03125, %v3799_v12 }
 0xd59   : > { %v3807_v62 = vsub.f32 %v5789_v43, %v3803_v48 }
 0xd5b   : > { %v3811_v56 = vmul.f32 %v3807_v62, %v3807_v62 }
 0xd5d   : > { %v3821_v51 = vsel %vm368_vm0, %v3811_v56, 0.0 }
 0xd5e   : > { %3822 = vadd.xlane.f32.xlu1 %v3821_v51 }
 0xd79   : > { %v3814_v35 = vpop.xlane.xlu0 %3813 }
 0xd7a   : > { %v3824_v57 = vmul.f32 0.03125, %v3814_v35 }
 0xd7c   : > { %v3828_v27 = vadd.f32 1e-05, %v3824_v57 }
 0xd7e   : > { %5021 = vrsqrt.f32 %v3828_v27 }
 0xd88   : > { %v5022_v61 = vpop.eup %5021 }
 0xd89   : > { %v3836_v55 = vmul.f32 %v5022_v61, %v3804_v52 }
 0xd8b   : > { %v3844_v50 = vmul.f32 %v3843_v5, %v3836_v55 }
 0xd8d   : > { %v3852_v44 = vadd.f32 %v3851_v14, %v3844_v50 }
 0xd8f   : > { %4646 = vmatprep.mubr.msk.f32.mxu0 %vm368_vm0, %v3852_v44 }
 0xdb2   : > { %v3817_v58 = vpop.xlane.xlu1 %3816  ;;  %v3820_v21 = vpop.xlane.xlu0 %3819 }
 0xdb3   : > { %v3825_v42 = vmul.f32 0.03125, %v3817_v58  ;;  %v3826_v18 = vmul.f32 0.03125, %v3820_v21 }
 0xdb5   : > { %v3829_v19 = vadd.f32 1e-05, %v3825_v42  ;;  %v3830_v63 = vadd.f32 1e-05, %v3826_v18 }
 0xdb7   : > { %5023 = vrsqrt.f32 %v3829_v19 }
 0xdb8   : > { %5025 = vrsqrt.f32 %v3830_v63 }
 0xdc1   : > { %v5024_v11 = vpop.eup %5023 }
 0xdc2   : > { %v5026_v30 = vpop.eup %5025  ;;  %v3837_v3 = vmul.f32 %v5024_v11, %v3805_v37 }
 0xdc3   : > { %v3838_v32 = vmul.f32 %v5026_v30, %v3806_v39 }
 0xdc4   : > { %v3845_v22 = vmul.f32 %v3843_v5, %v3837_v3 }
 0xdc5   : > { %v3846_v38 = vmul.f32 %v3843_v5, %v3838_v32  ;;  %v4024_v32 = vrot.slane %v5816_v8, %v818_v24 }
 0xdc6   : > { %v3853_v29 = vadd.f32 %v3851_v14, %v3845_v22 }
 0xdc7   : > { %v3854_v23 = vadd.f32 %v3851_v14, %v3846_v38 }
 0xdc8   : > { %4647 = vmatmul.mubr.msk.f32.vlgmr.msra.gmra.mrb[38].mxu0 %vm368_vm0, %v3853_v29 }
 0xdc9   : > { %4649 = vmatprep.mubr.msk.f32.mxu0 %vm368_vm0, %v3854_v23  ;;  %v4032_v23 = vrot.slane %v5816_v8, %v3862_v45 }
 0xdeb   : > { %v3823_v0 = vpop.xlane.xlu1 %3822 }
 0xdec   : > { %v3827_v47 = vmul.f32 0.03125, %v3823_v0 }
 0xdee   : > { %v3831_v53 = vadd.f32 1e-05, %v3827_v47 }
 0xdf0   : > { %5027 = vrsqrt.f32 %v3831_v53 }
 0xdfa   : > { %v5028_v4 = vpop.eup %5027 }
 0xdfb   : > { %v3839_v36 = vmul.f32 %v5028_v4, %v3807_v62 }
 0xdfd   : > { %v3847_v41 = vmul.f32 %v3843_v5, %v3839_v36 }
 0xdff   : > { %v3855_v33 = vadd.f32 %v3851_v14, %v3847_v41 }
 0xe01   : > { %4650 = vmatmul.mubr.msk.f32.gmra.mrb[40].mxu0 %vm368_vm0, %v3855_v33 }
 0xe9b   : > { %v4648_v52 = vpop.f32.mrb[38].mxu0 }
 0xe9c   : > { %v3948_v40 = vadd.f32 %v4648_v52, %v3863_v1  ;;  %v3942_v54 = vpop.f32.mrb[39].mxu0 }
 0xe9d   : > { %v3943_v17 = vadd.f32 %v3942_v54, %v3863_v1 }
 0xe9e   : > { %v3962_v59 = vmax.f32 %v3948_v40, 0.0 }
 0xe9f   : > { %v3961_v31 = vmax.f32 %v3943_v17, 0.0 }
 0xea0   : > { %v3966_v6 = vadd.f32 %v3962_v59, %v5775_v26 }
 0xea1   : > { %v3965_v37 = vadd.f32 %v3961_v31, %v5762_v46 }
 0xea2   : > { %v3972_v39 = vsel %vm368_vm0, %v3966_v6, 0.0 }
 0xea3   : > { %3973 = vadd.xlane.f32.xlu1 %v3972_v39  ;;  %v3969_v20 = vsel %vm368_vm0, %v3965_v37, 0.0 }
 0xea4   : > { %3970 = vadd.xlane.f32.xlu0 %v3969_v20 }
 0xed4   : > { %v4651_v9 = vpop.f32.mrb[40].mxu0 }
 0xed5   : > { %v3958_v10 = vadd.f32 %v4651_v9, %v3863_v1  ;;  %v3952_v34 = vpop.f32.mrb[41].mxu0 }
 0xed6   : > { %v3953_v7 = vadd.f32 %v3952_v34, %v3863_v1 }
 0xed7   : > { %v3964_v25 = vmax.f32 %v3958_v10, 0.0 }
 0xed8   : > { %v3963_v16 = vmax.f32 %v3953_v7, 0.0 }
 0xed9   : > { %v3968_v60 = vadd.f32 %v3964_v25, %v5789_v43 }
 0xeda   : > { %v3967_v2 = vadd.f32 %v3963_v16, %v5778_v28 }
 0xedb   : > { %v3978_v26 = vsel %vm368_vm0, %v3968_v60, 0.0 }
 0xedc   : > { %3979 = vadd.xlane.f32.xlu1 %v3978_v26  ;;  %v3975_v46 = vsel %vm368_vm0, %v3967_v2, 0.0 }
 0xedd   : > { %3976 = vadd.xlane.f32.xlu0 %v3975_v46 }
 0xf30   : > { %v3974_v13 = vpop.xlane.xlu1 %3973 }
 0xf31   : > { %v3982_v12 = vmul.f32 0.03125, %v3974_v13  ;;  %v3971_v48 = vpop.xlane.xlu0 %3970 }
 0xf32   : > { %v3981_v62 = vmul.f32 0.03125, %v3971_v48 }
 0xf33   : > { %v3986_v56 = vsub.f32 %v3966_v6, %v3982_v12 }
 0xf34   : > { %v3985_v51 = vsub.f32 %v3965_v37, %v3981_v62 }
 0xf35   : > { %v3990_v35 = vmul.f32 %v3986_v56, %v3986_v56 }
 0xf36   : > { %v3989_v57 = vmul.f32 %v3985_v51, %v3985_v51 }
 0xf37   : > { %v3996_v27 = vsel %vm368_vm0, %v3990_v35, 0.0 }
 0xf38   : > { %3997 = vadd.xlane.f32.xlu1 %v3996_v27  ;;  %v3993_v43 = vsel %vm368_vm0, %v3989_v57, 0.0 }
 0xf39   : > { %3994 = vadd.xlane.f32.xlu0 %v3993_v43 }
 0xf69   : > { %v3980_v28 = vpop.xlane.xlu1 %3979 }
 0xf6a   : > { %v3984_v5 = vmul.f32 0.03125, %v3980_v28  ;;  %v3977_v61 = vpop.xlane.xlu0 %3976 }
 0xf6b   : > { %v3983_v55 = vmul.f32 0.03125, %v3977_v61 }
 0xf6c   : > { %v3988_v14 = vsub.f32 %v3968_v60, %v3984_v5 }
 0xf6d   : > { %v3987_v50 = vsub.f32 %v3967_v2, %v3983_v55 }
 0xf6e   : > { %v3992_v44 = vmul.f32 %v3988_v14, %v3988_v14 }
 0xf6f   : > { %v3991_v58 = vmul.f32 %v3987_v50, %v3987_v50 }
 0xf70   : > { %v4002_v21 = vsel %vm368_vm0, %v3992_v44, 0.0 }
 0xf71   : > { %4003 = vadd.xlane.f32.xlu1 %v4002_v21  ;;  %v3999_v42 = vsel %vm368_vm0, %v3991_v58, 0.0 }
 0xf72   : > { %4000 = vadd.xlane.f32.xlu0 %v3999_v42 }
 0xfc5   : > { %v3998_v18 = vpop.xlane.xlu1 %3997 }
 0xfc6   : > { %v4006_v19 = vmul.f32 0.03125, %v3998_v18  ;;  %v3995_v63 = vpop.xlane.xlu0 %3994 }
 0xfc7   : > { %v4005_v11 = vmul.f32 0.03125, %v3995_v63 }
 0xfc8   : > { %v4010_v30 = vadd.f32 1e-05, %v4006_v19 }
 0xfc9   : > { %v4009_v3 = vadd.f32 1e-05, %v4005_v11 }
 0xfca   : > { %5029 = vrsqrt.f32 %v4010_v30 }
 0xfcb   : > { %5031 = vrsqrt.f32 %v4009_v3 }
 0xfd4   : > { %v5030_v22 = vpop.eup %5029 }
 0xfd5   : > { %v5032_v38 = vpop.eup %5031  ;;  %v4018_v29 = vmul.f32 %v5030_v22, %v3986_v56 }
 0xfd6   : > { %v4017_v0 = vmul.f32 %v5032_v38, %v3985_v51 }
 0xfd7   : > { %v4026_v47 = vmul.f32 %v4024_v32, %v4018_v29 }
 0xfd8   : > { %v4025_v53 = vmul.f32 %v4024_v32, %v4017_v0 }
 0xfd9   : > { %v4034_v36 = vadd.f32 %v4032_v23, %v4026_v47 }
 0xfda   : > { %v4033_v4 = vadd.f32 %v4032_v23, %v4025_v53 }
 0xfdb   : > { %4038 = vst.msk [vmem:[%s348_s10 + $0x8] sm:$0xff] %vm368_vm0, %v4034_v36 }
 0xfdc   : > { %4037 = vst.msk [vmem:[%s348_s10] sm:$0xff] %vm368_vm0, %v4033_v4 }
 0xffe   : > { %v4004_v24 = vpop.xlane.xlu1 %4003 }
 0xfff   : > { %v4008_v41 = vmul.f32 0.03125, %v4004_v24  ;;  %v4001_v33 = vpop.xlane.xlu0 %4000 }
0x1000   : > { %v4007_v49 = vmul.f32 0.03125, %v4001_v33 }
0x1001   : > { %v4012_v15 = vadd.f32 1e-05, %v4008_v41 }
0x1002   : > { %v4011_v8 = vadd.f32 1e-05, %v4007_v49 }
0x1003   : > { %5033 = vrsqrt.f32 %v4012_v15 }
0x1004   : > { %5035 = vrsqrt.f32 %v4011_v8 }
0x100d   : > { %v5034_v45 = vpop.eup %5033 }
0x100e   : > { %v5036_v1 = vpop.eup %5035  ;;  %v4020_v52 = vmul.f32 %v5034_v45, %v3988_v14 }
0x100f   : > { %v4019_v40 = vmul.f32 %v5036_v1, %v3987_v50 }
0x1010   : > { %v4028_v54 = vmul.f32 %v4024_v32, %v4020_v52 }
0x1011   : > { %v4027_v17 = vmul.f32 %v4024_v32, %v4019_v40 }
0x1012   : > { %v4036_v31 = vadd.f32 %v4032_v23, %v4028_v54 }
0x1013   : > { %v4035_v59 = vadd.f32 %v4032_v23, %v4027_v17 }
0x1014   : > { %4040 = vst.msk [vmem:[%s348_s10 + $0x18] sm:$0xff] %vm368_vm0, %v4036_v31 }
0x1015   : > { %4039 = vst.msk [vmem:[%s348_s10 + $0x10] sm:$0xff] %vm368_vm0, %v4035_v59 }
0x1016 PF: > { %s18_s27 = sadd.s32 1, %s5048_s27  }
0x1017   : > { %p15_p5 = scmp.ge.s32.totalorder %s18_s27, 4  }
0x1019   :  { %17 = sbr.rel (!%p15_p5) target bundleno = 1 (0x1), region = 88 }

</bundles_post_ra>
